<compile_context>
chip_gen: v5e
topology: v5e:2x2
jax: 0.10.0
libtpu: 0.0.40
codegen_flags: <defaults>
</compile_context>

<pallas_src>
import functools

import jax
import jax.numpy as jnp
from jax.experimental import pallas as pl
from jax.experimental.pallas import tpu as pltpu

_EPS = 1e-5
_SHIFTS = tuple((dh, dw) for dh in (-1, 0, 1) for dw in (-1, 0, 1))


def _bn_relu_conv3x3_kernel(x_ref, scale_ref, bias_ref, wt_ref, b_ref, mask_ref,
                            out_ref, sum_ref, ssq_ref, colt_ref, *, H, W):
    # x_ref    : (1, Cin, H*W)    raw (pre-BN) activation (f32 or bf16), spatial on lanes
    # scale_ref: (Cin, 1)  f32    folded BN scale = gamma / sqrt(var + eps)
    # bias_ref : (Cin, 1)  f32    folded BN bias  = beta - mean * scale
    # wt_ref   : (Cout, 9*Cin)    transposed im2col weights (compute dtype),
    #                             column = (kh*3 + kw)*Cin + ci
    # b_ref    : (Cout, 1) f32    conv bias
    # mask_ref : (9, H*W)  f32    1.0 where tap (kh, kw) lands inside the image, else 0.0
    # out_ref  : (1, Cout, H*W)   conv output (lane-dense store)
    # sum_ref  : (1, Cout, 1) f32 sum_{h,w} y       (fused stats for the next BN)
    # ssq_ref  : (1, Cout, 1) f32 sum_{h,w} y*y
    # colt_ref : (9*Cin, H*W)     compute-dtype VMEM scratch holding the im2col operand
    HW = H * W
    cdt = wt_ref.dtype                                  # MXU compute dtype (bf16 in prod)

    # Folded BN affine + ReLU, always in f32 on the VPU (input may be stored in bf16).
    x = x_ref[0].astype(jnp.float32)                    # (Cin, H*W)
    act = jnp.maximum(x * scale_ref[...] + bias_ref[...], 0.0)

    # Transposed im2col: slab k = (kh*3 + kw) is the activation shifted by
    # (dh, dw) = (kh-1, kw-1) in flat spatial coordinates.  A circular lane-roll by
    # -(dh*W + dw) followed by a precomputed boundary mask is exactly conv padding=1
    # (invalid / wrapped taps -> 0).  The roll runs on the XLU (separate issue slot) and
    # each slab is written exactly once, in the compute dtype, into the scratch.
    Cin = x_ref.shape[1]
    for k, (dh, dw) in enumerate(_SHIFTS):
        s = dh * W + dw
        shifted = act if s == 0 else pltpu.roll(act, shift=(-s) % HW, axis=1)
        slab = shifted * mask_ref[k:k + 1, :]           # zero out-of-bounds taps
        colt_ref[pl.ds(k * Cin, Cin), :] = slab.astype(cdt)

    # One MXU matmul: (Cout, 9*Cin) @ (9*Cin, H*W) -> (Cout, H*W), f32 accumulation.
    y = jnp.dot(wt_ref[...], colt_ref[...], preferred_element_type=jnp.float32)
    y = y + b_ref[...]                                  # conv-bias epilogue (f32)

    out_ref[0] = y.astype(out_ref.dtype)                # lane-dense store (H*W on lanes)

    # BN-statistics epilogue: per-(batch, channel) partial sums, finished in JAX, so the
    # next layer's mean/var never re-read this activation from HBM.
    sum_ref[0] = jnp.sum(y, axis=1, keepdims=True)
    ssq_ref[0] = jnp.sum(y * y, axis=1, keepdims=True)


def _shift_masks(H, W):
    """(9, H*W) f32 validity masks for the 9 conv taps with padding=1 (built in XLA)."""
    hh = jnp.arange(H * W, dtype=jnp.int32) // W
    ww = jnp.arange(H * W, dtype=jnp.int32) % W
    rows = []
    for dh, dw in _SHIFTS:
        ok = (hh + dh >= 0) & (hh + dh < H) & (ww + dw >= 0) & (ww + dw < W)
        rows.append(ok)
    return jnp.stack(rows, axis=0).astype(jnp.float32)


def fused_bn_relu_conv3x3(x_ncp, gamma, beta, mean, var, w_oihw, b, *, H, W,
                          compute_dtype=jnp.bfloat16, out_dtype=jnp.float32):
    """y = Conv3x3(ReLU(BN(x)), pad=1) in flattened-NCHW layout.

    x_ncp: (N, Cin, H*W).  Returns (y (N, Cout, H*W), per-batch channel sums (N, Cout, 1),
    per-batch channel sums-of-squares (N, Cout, 1)) — the stats feed the next BatchNorm.
    """
    N, Cin, HW = x_ncp.shape
    assert HW == H * W
    Cout = w_oihw.shape[0]

    inv_std = gamma / jnp.sqrt(var + _EPS)
    scale = inv_std.reshape(Cin, 1).astype(jnp.float32)
    bias = (beta - mean * inv_std).reshape(Cin, 1).astype(jnp.float32)
    # OIHW -> (Cout, 9*Cin); column = (kh*3 + kw)*Cin + ci matches the kernel's im2col
    # slab order.  Cast once here to the MXU compute dtype.
    wt = jnp.transpose(w_oihw, (0, 2, 3, 1)).reshape(Cout, 9 * Cin).astype(compute_dtype)
    b_k = b.reshape(Cout, 1).astype(jnp.float32)
    masks = _shift_masks(H, W)

    # VMEM budget derived from actual tile sizes: double-buffered x/out blocks, resident
    # weights/scale/bias/masks (constant index maps), im2col scratch, plus headroom.
    # Capped at 48 MiB to stay under v7x's 64 MiB physical VMEM; raise toward ~100 MiB on
    # v5e/v6e once the production H-tile grid (TODO below) lands and bigger tiles pay off.
    isz = lambda dt: jnp.dtype(dt).itemsize
    need = (2 * Cin * HW * isz(x_ncp.dtype)
            + 2 * Cout * HW * isz(out_dtype)
            + Cout * 9 * Cin * isz(compute_dtype)
            + 9 * HW * 4
            + 9 * Cin * HW * isz(compute_dtype)
            + (4 << 20))
    vmem_limit = int(min(max(need, 16 << 20), 48 << 20))

    # TODO(synk): for production UNet feature maps (e.g. 256x256x64) add an H-tile grid
    # axis with a 2-row halo — the monolithic per-image im2col operand does not fit v7x's
    # 64 MiB VMEM — and mark it "parallel" so both v7x TensorCores get work even at N=1.
    out_shape = (
        jax.ShapeDtypeStruct((N, Cout, HW), out_dtype),
        jax.ShapeDtypeStruct((N, Cout, 1), jnp.float32),
        jax.ShapeDtypeStruct((N, Cout, 1), jnp.float32),
    )
    y, s, ss = pl.pallas_call(
        functools.partial(_bn_relu_conv3x3_kernel, H=H, W=W),
        out_shape=out_shape,
        grid=(N,),
        in_specs=[
            pl.BlockSpec((1, Cin, HW), lambda n: (n, 0, 0)),
            pl.BlockSpec((Cin, 1), lambda n: (0, 0)),        # resident across grid steps
            pl.BlockSpec((Cin, 1), lambda n: (0, 0)),
            pl.BlockSpec((Cout, 9 * Cin), lambda n: (0, 0)),
            pl.BlockSpec((Cout, 1), lambda n: (0, 0)),
            pl.BlockSpec((9, HW), lambda n: (0, 0)),
        ],
        out_specs=(
            pl.BlockSpec((1, Cout, HW), lambda n: (n, 0, 0)),
            pl.BlockSpec((1, Cout, 1), lambda n: (n, 0, 0)),
            pl.BlockSpec((1, Cout, 1), lambda n: (n, 0, 0)),
        ),
        scratch_shapes=[pltpu.VMEM((9 * Cin, HW), compute_dtype)],
        compiler_params=pltpu.CompilerParams(
            dimension_semantics=("parallel",),
            vmem_limit_bytes=vmem_limit,
        ),
    )(x_ncp, scale, bias, wt, b_k, masks)
    return y, s, ss


def continus_paralle_conv_forward(x_nchw, params, *, compute_dtype=jnp.bfloat16):
    """ContinusParalleConv(pre_Batch_Norm=True).forward with training-mode BN statistics."""
    # TODO(synk): pre_Batch_Norm=False branch (Conv->BN->ReLU->Conv->BN->ReLU) not implemented.
    N, Cin, H, W = x_nchw.shape
    Cout = params["w2"].shape[0]
    cnt = float(N * H * W)

    # (N,C,H,W) -> (N,C,H*W) is a free row-major reshape: the kernels consume/produce the
    # PyTorch NCHW layout directly (no NHWC transposes in the wrapper).
    x = x_nchw.astype(jnp.float32).reshape(N, Cin, H * W)

    # BN1 statistics over the raw input (biased variance = BatchNorm2d training forward).
    # TODO(synk): separate XLA pass over x; could be fused into a small stats kernel.
    mean1 = jnp.mean(x, axis=(0, 2))
    var1 = jnp.var(x, axis=(0, 2))

    # Inter-layer activation kept in bf16 (halves layer-1 writeback / layer-2 readback);
    # its BN statistics come from the kernel's f32 partial sums, not from the bf16 tensor.
    inter_dtype = (jnp.bfloat16 if jnp.dtype(compute_dtype) == jnp.dtype(jnp.bfloat16)
                   else jnp.float32)
    y1, s1, ss1 = fused_bn_relu_conv3x3(
        x, params["gamma1"], params["beta1"], mean1, var1, params["w1"], params["b1"],
        H=H, W=W, compute_dtype=compute_dtype, out_dtype=inter_dtype)

    mean2 = jnp.sum(s1, axis=(0, 2)) / cnt
    var2 = jnp.maximum(jnp.sum(ss1, axis=(0, 2)) / cnt - mean2 * mean2, 0.0)
    y2, _, _ = fused_bn_relu_conv3x3(
        y1, params["gamma2"], params["beta2"], mean2, var2, params["w2"], params["b2"],
        H=H, W=W, compute_dtype=compute_dtype, out_dtype=jnp.float32)

    return y2.reshape(N, Cout, H, W)


# ---------------- pure-JAX reference (for correctness checks) ----------------
def _ref_bn_relu_conv(x_nchw, gamma, beta, w_oihw, b):
    mean = jnp.mean(x_nchw, axis=(0, 2, 3))
    var = jnp.var(x_nchw, axis=(0, 2, 3))
    xh = (x_nchw - mean[None, :, None, None]) / jnp.sqrt(var + _EPS)[None, :, None, None]
    xh = xh * gamma[None, :, None, None] + beta[None, :, None, None]
    xr = jnp.maximum(xh, 0.0)
    y = jax.lax.conv_general_dilated(
        xr, w_oihw, window_strides=(1, 1), padding=((1, 1), (1, 1)),
        dimension_numbers=("NCHW", "OIHW", "NCHW"),
        precision=jax.lax.Precision.HIGHEST)
    return y + b[None, :, None, None]


def reference_forward(x_nchw, params):
    y1 = _ref_bn_relu_conv(x_nchw, params["gamma1"], params["beta1"], params["w1"], params["b1"])
    y2 = _ref_bn_relu_conv(y1, params["gamma2"], params["beta2"], params["w2"], params["b2"])
    return y2


if __name__ == "__main__":
    key = jax.random.PRNGKey(0)
    N, in_ch, out_ch, H, W = 2, 4, 8, 16, 16
    ks = jax.random.split(key, 9)

    x = jax.random.normal(ks[0], (N, in_ch, H, W), jnp.float32)

    # Deterministic synthetic parameters (PyTorch shapes: Conv2d OIHW, BN per-channel).
    params = {
        "w1": jax.random.normal(ks[1], (out_ch, in_ch, 3, 3), jnp.float32) * 0.1,
        "b1": jax.random.normal(ks[2], (out_ch,), jnp.float32) * 0.1,
        "w2": jax.random.normal(ks[3], (out_ch, out_ch, 3, 3), jnp.float32) * 0.1,
        "b2": jax.random.normal(ks[4], (out_ch,), jnp.float32) * 0.1,
        "gamma1": 1.0 + 0.1 * jax.random.normal(ks[5], (in_ch,), jnp.float32),
        "beta1": 0.1 * jax.random.normal(ks[6], (in_ch,), jnp.float32),
        "gamma2": 1.0 + 0.1 * jax.random.normal(ks[7], (out_ch,), jnp.float32),
        "beta2": 0.1 * jax.random.normal(ks[8], (out_ch,), jnp.float32),
    }

    y_ref = jax.block_until_ready(reference_forward(x, params))

    # f32 MXU path: tight numerical check of the fused kernel structure.
    fwd_f32 = jax.jit(functools.partial(continus_paralle_conv_forward,
                                        compute_dtype=jnp.float32))
    y_f32 = jax.block_until_ready(fwd_f32(x, params))
    assert y_f32.shape == (N, out_ch, H, W), y_f32.shape
    err_f32 = float(jnp.max(jnp.abs(y_f32 - y_ref)))
    assert err_f32 < 1e-2, f"f32 path max abs err {err_f32}"

    # bf16 MXU path (production default): bf16 im2col/matmul operands + bf16 inter-layer
    # activation, f32 accumulation, f32 BN statistics.
    fwd_bf16 = jax.jit(functools.partial(continus_paralle_conv_forward,
                                         compute_dtype=jnp.bfloat16))
    y_bf16 = jax.block_until_ready(fwd_bf16(x, params))
    assert y_bf16.shape == (N, out_ch, H, W), y_bf16.shape
    err_bf16 = float(jnp.max(jnp.abs(y_bf16 - y_ref)))
    assert err_bf16 < 1e-1, f"bf16 path max abs err {err_bf16}"

    print("KERNEL_OK")
</pallas_src>

<mosaic_0001>
module attributes {stable_mosaic.version = 11 : i64} {
  func.func @_bn_relu_conv3x3_kernel(%arg0: i32, %arg1: memref<1x8x256xf32, #tpu.memory_space<vmem>>, %arg2: memref<8x1xf32, #tpu.memory_space<vmem>>, %arg3: memref<8x1xf32, #tpu.memory_space<vmem>>, %arg4: memref<8x72xf32, #tpu.memory_space<vmem>>, %arg5: memref<8x1xf32, #tpu.memory_space<vmem>>, %arg6: memref<9x256xf32, #tpu.memory_space<vmem>>, %arg7: memref<1x8x256xf32, #tpu.memory_space<vmem>>, %arg8: memref<1x8x1xf32, #tpu.memory_space<vmem>>, %arg9: memref<1x8x1xf32, #tpu.memory_space<vmem>>, %arg10: memref<72x256xf32, #tpu.memory_space<vmem>>) attributes {dimension_semantics = [#tpu.dimension_semantics<parallel>], iteration_bounds = array<i64: 2>, scalar_prefetch = 0 : i64, scratch_operands = 1 : i64, tpu.core_type = #tpu.core_type<tc>, window_params = [{transform_indices = @transform_0, window_bounds = array<i64: 1, 8, 256>}, {pipeline_mode = #tpu.pipeline_mode<synchronous>, transform_indices = @transform_1, window_bounds = array<i64: 8, 1>}, {pipeline_mode = #tpu.pipeline_mode<synchronous>, transform_indices = @transform_2, window_bounds = array<i64: 8, 1>}, {pipeline_mode = #tpu.pipeline_mode<synchronous>, transform_indices = @transform_3, window_bounds = array<i64: 8, 72>}, {pipeline_mode = #tpu.pipeline_mode<synchronous>, transform_indices = @transform_4, window_bounds = array<i64: 8, 1>}, {pipeline_mode = #tpu.pipeline_mode<synchronous>, transform_indices = @transform_5, window_bounds = array<i64: 9, 256>}, {transform_indices = @transform_6, window_bounds = array<i64: 1, 8, 256>}, {transform_indices = @transform_7, window_bounds = array<i64: 1, 8, 1>}, {transform_indices = @transform_8, window_bounds = array<i64: 1, 8, 1>}]} {
    %c0 = arith.constant 0 : index
    %c0_0 = arith.constant 0 : index
    %c0_1 = arith.constant 0 : index
    %0 = vector.load %arg1[%c0, %c0_0, %c0_1] : memref<1x8x256xf32, #tpu.memory_space<vmem>>, vector<1x8x256xf32>
    %1 = vector.shape_cast %0 : vector<1x8x256xf32> to vector<8x256xf32>
    %c0_2 = arith.constant 0 : index
    %c0_3 = arith.constant 0 : index
    %2 = vector.load %arg2[%c0_2, %c0_3] : memref<8x1xf32, #tpu.memory_space<vmem>>, vector<8x1xf32>
    %3 = vector.broadcast %2 : vector<8x1xf32> to vector<8x256xf32>
    %4 = arith.mulf %1, %3 : vector<8x256xf32>
    %c0_4 = arith.constant 0 : index
    %c0_5 = arith.constant 0 : index
    %5 = vector.load %arg3[%c0_4, %c0_5] : memref<8x1xf32, #tpu.memory_space<vmem>>, vector<8x1xf32>
    %6 = vector.broadcast %5 : vector<8x1xf32> to vector<8x256xf32>
    %7 = arith.addf %4, %6 : vector<8x256xf32>
    %cst = arith.constant 0.000000e+00 : f32
    %8 = vector.broadcast %cst : f32 to vector<8x256xf32>
    %9 = arith.maximumf %7, %8 : vector<8x256xf32>
    %c17_i32 = arith.constant 17 : i32
    %10 = tpu.dynamic_rotate %9 by %c17_i32 dim 1 : vector<8x256xf32>, i32 -> vector<8x256xf32>
    %c0_6 = arith.constant 0 : index
    %c0_7 = arith.constant 0 : index
    %11 = vector.load %arg6[%c0_6, %c0_7] : memref<9x256xf32, #tpu.memory_space<vmem>>, vector<1x256xf32>
    %12 = vector.broadcast %11 : vector<1x256xf32> to vector<8x256xf32>
    %13 = arith.mulf %10, %12 : vector<8x256xf32>
    %c0_8 = arith.constant 0 : index
    %c0_9 = arith.constant 0 : index
    %14 = vector.load %arg10[%c0_8, %c0_9] : memref<72x256xf32, #tpu.memory_space<vmem>>, vector<8x256xf32>
    tpu.vector_store %arg10[%c0_8, %c0_9], %13 {strides = array<i32>} : memref<72x256xf32, #tpu.memory_space<vmem>>, vector<8x256xf32>,
    %c16_i32 = arith.constant 16 : i32
    %15 = tpu.dynamic_rotate %9 by %c16_i32 dim 1 : vector<8x256xf32>, i32 -> vector<8x256xf32>
    %c1 = arith.constant 1 : index
    %c0_10 = arith.constant 0 : index
    %16 = vector.load %arg6[%c1, %c0_10] : memref<9x256xf32, #tpu.memory_space<vmem>>, vector<1x256xf32>
    %17 = vector.broadcast %16 : vector<1x256xf32> to vector<8x256xf32>
    %18 = arith.mulf %15, %17 : vector<8x256xf32>
    %c8 = arith.constant 8 : index
    %c0_11 = arith.constant 0 : index
    %19 = vector.load %arg10[%c8, %c0_11] : memref<72x256xf32, #tpu.memory_space<vmem>>, vector<8x256xf32>
    tpu.vector_store %arg10[%c8, %c0_11], %18 {strides = array<i32>} : memref<72x256xf32, #tpu.memory_space<vmem>>, vector<8x256xf32>,
    %c15_i32 = arith.constant 15 : i32
    %20 = tpu.dynamic_rotate %9 by %c15_i32 dim 1 : vector<8x256xf32>, i32 -> vector<8x256xf32>
    %c2 = arith.constant 2 : index
    %c0_12 = arith.constant 0 : index
    %21 = vector.load %arg6[%c2, %c0_12] : memref<9x256xf32, #tpu.memory_space<vmem>>, vector<1x256xf32>
    %22 = vector.broadcast %21 : vector<1x256xf32> to vector<8x256xf32>
    %23 = arith.mulf %20, %22 : vector<8x256xf32>
    %c16 = arith.constant 16 : index
    %c0_13 = arith.constant 0 : index
    %24 = vector.load %arg10[%c16, %c0_13] : memref<72x256xf32, #tpu.memory_space<vmem>>, vector<8x256xf32>
    tpu.vector_store %arg10[%c16, %c0_13], %23 {strides = array<i32>} : memref<72x256xf32, #tpu.memory_space<vmem>>, vector<8x256xf32>,
    %c1_i32 = arith.constant 1 : i32
    %25 = tpu.dynamic_rotate %9 by %c1_i32 dim 1 : vector<8x256xf32>, i32 -> vector<8x256xf32>
    %c3 = arith.constant 3 : index
    %c0_14 = arith.constant 0 : index
    %26 = vector.load %arg6[%c3, %c0_14] : memref<9x256xf32, #tpu.memory_space<vmem>>, vector<1x256xf32>
    %27 = vector.broadcast %26 : vector<1x256xf32> to vector<8x256xf32>
    %28 = arith.mulf %25, %27 : vector<8x256xf32>
    %c24 = arith.constant 24 : index
    %c0_15 = arith.constant 0 : index
    %29 = vector.load %arg10[%c24, %c0_15] : memref<72x256xf32, #tpu.memory_space<vmem>>, vector<8x256xf32>
    tpu.vector_store %arg10[%c24, %c0_15], %28 {strides = array<i32>} : memref<72x256xf32, #tpu.memory_space<vmem>>, vector<8x256xf32>,
    %c4 = arith.constant 4 : index
    %c0_16 = arith.constant 0 : index
    %30 = vector.load %arg6[%c4, %c0_16] : memref<9x256xf32, #tpu.memory_space<vmem>>, vector<1x256xf32>
    %31 = vector.broadcast %30 : vector<1x256xf32> to vector<8x256xf32>
    %32 = arith.mulf %9, %31 : vector<8x256xf32>
    %c32 = arith.constant 32 : index
    %c0_17 = arith.constant 0 : index
    %33 = vector.load %arg10[%c32, %c0_17] : memref<72x256xf32, #tpu.memory_space<vmem>>, vector<8x256xf32>
    tpu.vector_store %arg10[%c32, %c0_17], %32 {strides = array<i32>} : memref<72x256xf32, #tpu.memory_space<vmem>>, vector<8x256xf32>,
    %c255_i32 = arith.constant 255 : i32
    %34 = tpu.dynamic_rotate %9 by %c255_i32 dim 1 : vector<8x256xf32>, i32 -> vector<8x256xf32>
    %c5 = arith.constant 5 : index
    %c0_18 = arith.constant 0 : index
    %35 = vector.load %arg6[%c5, %c0_18] : memref<9x256xf32, #tpu.memory_space<vmem>>, vector<1x256xf32>
    %36 = vector.broadcast %35 : vector<1x256xf32> to vector<8x256xf32>
    %37 = arith.mulf %34, %36 : vector<8x256xf32>
    %c40 = arith.constant 40 : index
    %c0_19 = arith.constant 0 : index
    %38 = vector.load %arg10[%c40, %c0_19] : memref<72x256xf32, #tpu.memory_space<vmem>>, vector<8x256xf32>
    tpu.vector_store %arg10[%c40, %c0_19], %37 {strides = array<i32>} : memref<72x256xf32, #tpu.memory_space<vmem>>, vector<8x256xf32>,
    %c241_i32 = arith.constant 241 : i32
    %39 = tpu.dynamic_rotate %9 by %c241_i32 dim 1 : vector<8x256xf32>, i32 -> vector<8x256xf32>
    %c6 = arith.constant 6 : index
    %c0_20 = arith.constant 0 : index
    %40 = vector.load %arg6[%c6, %c0_20] : memref<9x256xf32, #tpu.memory_space<vmem>>, vector<1x256xf32>
    %41 = vector.broadcast %40 : vector<1x256xf32> to vector<8x256xf32>
    %42 = arith.mulf %39, %41 : vector<8x256xf32>
    %c48 = arith.constant 48 : index
    %c0_21 = arith.constant 0 : index
    %43 = vector.load %arg10[%c48, %c0_21] : memref<72x256xf32, #tpu.memory_space<vmem>>, vector<8x256xf32>
    tpu.vector_store %arg10[%c48, %c0_21], %42 {strides = array<i32>} : memref<72x256xf32, #tpu.memory_space<vmem>>, vector<8x256xf32>,
    %c240_i32 = arith.constant 240 : i32
    %44 = tpu.dynamic_rotate %9 by %c240_i32 dim 1 : vector<8x256xf32>, i32 -> vector<8x256xf32>
    %c7 = arith.constant 7 : index
    %c0_22 = arith.constant 0 : index
    %45 = vector.load %arg6[%c7, %c0_22] : memref<9x256xf32, #tpu.memory_space<vmem>>, vector<1x256xf32>
    %46 = vector.broadcast %45 : vector<1x256xf32> to vector<8x256xf32>
    %47 = arith.mulf %44, %46 : vector<8x256xf32>
    %c56 = arith.constant 56 : index
    %c0_23 = arith.constant 0 : index
    %48 = vector.load %arg10[%c56, %c0_23] : memref<72x256xf32, #tpu.memory_space<vmem>>, vector<8x256xf32>
    tpu.vector_store %arg10[%c56, %c0_23], %47 {strides = array<i32>} : memref<72x256xf32, #tpu.memory_space<vmem>>, vector<8x256xf32>,
    %c239_i32 = arith.constant 239 : i32
    %49 = tpu.dynamic_rotate %9 by %c239_i32 dim 1 : vector<8x256xf32>, i32 -> vector<8x256xf32>
    %c8_24 = arith.constant 8 : index
    %c0_25 = arith.constant 0 : index
    %50 = vector.load %arg6[%c8_24, %c0_25] : memref<9x256xf32, #tpu.memory_space<vmem>>, vector<1x256xf32>
    %51 = vector.broadcast %50 : vector<1x256xf32> to vector<8x256xf32>
    %52 = arith.mulf %49, %51 : vector<8x256xf32>
    %c64 = arith.constant 64 : index
    %c0_26 = arith.constant 0 : index
    %53 = vector.load %arg10[%c64, %c0_26] : memref<72x256xf32, #tpu.memory_space<vmem>>, vector<8x256xf32>
    tpu.vector_store %arg10[%c64, %c0_26], %52 {strides = array<i32>} : memref<72x256xf32, #tpu.memory_space<vmem>>, vector<8x256xf32>,
    %c0_27 = arith.constant 0 : index
    %c0_28 = arith.constant 0 : index
    %54 = vector.load %arg4[%c0_27, %c0_28] : memref<8x72xf32, #tpu.memory_space<vmem>>, vector<8x72xf32>
    %c0_29 = arith.constant 0 : index
    %c0_30 = arith.constant 0 : index
    %55 = vector.load %arg10[%c0_29, %c0_30] : memref<72x256xf32, #tpu.memory_space<vmem>>, vector<72x256xf32>
    %cst_31 = arith.constant dense<0.000000e+00> : vector<8x256xf32>
    %56 = tpu.matmul %54, %55, %cst_31 {dimension_numbers = #tpu.dot_dimension_numbers<[1], [0], [0], [1], [0, 0, 1, 1], [], []>} : vector<8x72xf32>, vector<72x256xf32>, vector<8x256xf32> -> vector<8x256xf32>
    %c0_32 = arith.constant 0 : index
    %c0_33 = arith.constant 0 : index
    %57 = vector.load %arg5[%c0_32, %c0_33] : memref<8x1xf32, #tpu.memory_space<vmem>>, vector<8x1xf32>
    %58 = vector.broadcast %57 : vector<8x1xf32> to vector<8x256xf32>
    %59 = arith.addf %56, %58 : vector<8x256xf32>
    %c0_34 = arith.constant 0 : index
    %c0_35 = arith.constant 0 : index
    %c0_36 = arith.constant 0 : index
    %60 = vector.load %arg7[%c0_34, %c0_35, %c0_36] : memref<1x8x256xf32, #tpu.memory_space<vmem>>, vector<1x8x256xf32>
    %61 = vector.shape_cast %60 : vector<1x8x256xf32> to vector<8x256xf32>
    %62 = vector.shape_cast %59 : vector<8x256xf32> to vector<1x8x256xf32>
    tpu.vector_store %arg7[%c0_34, %c0_35, %c0_36], %62 {strides = array<i32>} : memref<1x8x256xf32, #tpu.memory_space<vmem>>, vector<1x8x256xf32>,
    %cst_37 = arith.constant dense<0.000000e+00> : vector<8xf32>
    %63 = vector.multi_reduction <add>, %59, %cst_37 [1] : vector<8x256xf32> to vector<8xf32>
    %64 = vector.shape_cast %63 : vector<8xf32> to vector<8x1xf32>
    %c0_38 = arith.constant 0 : index
    %c0_39 = arith.constant 0 : index
    %c0_40 = arith.constant 0 : index
    %65 = vector.load %arg8[%c0_38, %c0_39, %c0_40] : memref<1x8x1xf32, #tpu.memory_space<vmem>>, vector<1x8x1xf32>
    %66 = vector.shape_cast %65 : vector<1x8x1xf32> to vector<8x1xf32>
    %67 = vector.shape_cast %64 : vector<8x1xf32> to vector<1x8x1xf32>
    tpu.vector_store %arg8[%c0_38, %c0_39, %c0_40], %67 {strides = array<i32>} : memref<1x8x1xf32, #tpu.memory_space<vmem>>, vector<1x8x1xf32>,
    %68 = arith.mulf %59, %59 : vector<8x256xf32>
    %cst_41 = arith.constant dense<0.000000e+00> : vector<8xf32>
    %69 = vector.multi_reduction <add>, %68, %cst_41 [1] : vector<8x256xf32> to vector<8xf32>
    %70 = vector.shape_cast %69 : vector<8xf32> to vector<8x1xf32>
    %c0_42 = arith.constant 0 : index
    %c0_43 = arith.constant 0 : index
    %c0_44 = arith.constant 0 : index
    %71 = vector.load %arg9[%c0_42, %c0_43, %c0_44] : memref<1x8x1xf32, #tpu.memory_space<vmem>>, vector<1x8x1xf32>
    %72 = vector.shape_cast %71 : vector<1x8x1xf32> to vector<8x1xf32>
    %73 = vector.shape_cast %70 : vector<8x1xf32> to vector<1x8x1xf32>
    tpu.vector_store %arg9[%c0_42, %c0_43, %c0_44], %73 {strides = array<i32>} : memref<1x8x1xf32, #tpu.memory_space<vmem>>, vector<1x8x1xf32>,
    return
  }
  func.func @transform_0(%arg0: i32) -> (i32, i32, i32) {
    %c0_i32 = arith.constant 0 : i32
    %c0_i32_0 = arith.constant 0 : i32
    %c0_i32_1 = arith.constant 0 : i32
    return %arg0, %c0_i32, %c0_i32_0 : i32, i32, i32
  }
  func.func @transform_1(%arg0: i32) -> (i32, i32) {
    %c0_i32 = arith.constant 0 : i32
    %c0_i32_0 = arith.constant 0 : i32
    %c0_i32_1 = arith.constant 0 : i32
    return %c0_i32, %c0_i32_0 : i32, i32
  }
  func.func @transform_2(%arg0: i32) -> (i32, i32) {
    %c0_i32 = arith.constant 0 : i32
    %c0_i32_0 = arith.constant 0 : i32
    %c0_i32_1 = arith.constant 0 : i32
    return %c0_i32, %c0_i32_0 : i32, i32
  }
  func.func @transform_3(%arg0: i32) -> (i32, i32) {
    %c0_i32 = arith.constant 0 : i32
    %c0_i32_0 = arith.constant 0 : i32
    %c0_i32_1 = arith.constant 0 : i32
    return %c0_i32, %c0_i32_0 : i32, i32
  }
  func.func @transform_4(%arg0: i32) -> (i32, i32) {
    %c0_i32 = arith.constant 0 : i32
    %c0_i32_0 = arith.constant 0 : i32
    %c0_i32_1 = arith.constant 0 : i32
    return %c0_i32, %c0_i32_0 : i32, i32
  }
  func.func @transform_5(%arg0: i32) -> (i32, i32) {
    %c0_i32 = arith.constant 0 : i32
    %c0_i32_0 = arith.constant 0 : i32
    %c0_i32_1 = arith.constant 0 : i32
    return %c0_i32, %c0_i32_0 : i32, i32
  }
  func.func @transform_6(%arg0: i32) -> (i32, i32, i32) {
    %c0_i32 = arith.constant 0 : i32
    %c0_i32_0 = arith.constant 0 : i32
    %c0_i32_1 = arith.constant 0 : i32
    return %arg0, %c0_i32, %c0_i32_0 : i32, i32, i32
  }
  func.func @transform_7(%arg0: i32) -> (i32, i32, i32) {
    %c0_i32 = arith.constant 0 : i32
    %c0_i32_0 = arith.constant 0 : i32
    %c0_i32_1 = arith.constant 0 : i32
    return %arg0, %c0_i32, %c0_i32_0 : i32, i32, i32
  }
  func.func @transform_8(%arg0: i32) -> (i32, i32, i32) {
    %c0_i32 = arith.constant 0 : i32
    %c0_i32_0 = arith.constant 0 : i32
    %c0_i32_1 = arith.constant 0 : i32
    return %arg0, %c0_i32, %c0_i32_0 : i32, i32, i32
  }
}

module attributes {stable_mosaic.version = 11 : i64} {
  func.func @_bn_relu_conv3x3_kernel(%arg0: i32, %arg1: memref<1x4x256xf32, #tpu.memory_space<vmem>>, %arg2: memref<4x1xf32, #tpu.memory_space<vmem>>, %arg3: memref<4x1xf32, #tpu.memory_space<vmem>>, %arg4: memref<8x36xf32, #tpu.memory_space<vmem>>, %arg5: memref<8x1xf32, #tpu.memory_space<vmem>>, %arg6: memref<9x256xf32, #tpu.memory_space<vmem>>, %arg7: memref<1x8x256xf32, #tpu.memory_space<vmem>>, %arg8: memref<1x8x1xf32, #tpu.memory_space<vmem>>, %arg9: memref<1x8x1xf32, #tpu.memory_space<vmem>>, %arg10: memref<36x256xf32, #tpu.memory_space<vmem>>) attributes {dimension_semantics = [#tpu.dimension_semantics<parallel>], iteration_bounds = array<i64: 2>, scalar_prefetch = 0 : i64, scratch_operands = 1 : i64, tpu.core_type = #tpu.core_type<tc>, window_params = [{transform_indices = @transform_0, window_bounds = array<i64: 1, 4, 256>}, {pipeline_mode = #tpu.pipeline_mode<synchronous>, transform_indices = @transform_1, window_bounds = array<i64: 4, 1>}, {pipeline_mode = #tpu.pipeline_mode<synchronous>, transform_indices = @transform_2, window_bounds = array<i64: 4, 1>}, {pipeline_mode = #tpu.pipeline_mode<synchronous>, transform_indices = @transform_3, window_bounds = array<i64: 8, 36>}, {pipeline_mode = #tpu.pipeline_mode<synchronous>, transform_indices = @transform_4, window_bounds = array<i64: 8, 1>}, {pipeline_mode = #tpu.pipeline_mode<synchronous>, transform_indices = @transform_5, window_bounds = array<i64: 9, 256>}, {transform_indices = @transform_6, window_bounds = array<i64: 1, 8, 256>}, {transform_indices = @transform_7, window_bounds = array<i64: 1, 8, 1>}, {transform_indices = @transform_8, window_bounds = array<i64: 1, 8, 1>}]} {
    %c0 = arith.constant 0 : index
    %c0_0 = arith.constant 0 : index
    %c0_1 = arith.constant 0 : index
    %0 = vector.load %arg1[%c0, %c0_0, %c0_1] : memref<1x4x256xf32, #tpu.memory_space<vmem>>, vector<1x4x256xf32>
    %1 = vector.shape_cast %0 : vector<1x4x256xf32> to vector<4x256xf32>
    %c0_2 = arith.constant 0 : index
    %c0_3 = arith.constant 0 : index
    %2 = vector.load %arg2[%c0_2, %c0_3] : memref<4x1xf32, #tpu.memory_space<vmem>>, vector<4x1xf32>
    %3 = vector.broadcast %2 : vector<4x1xf32> to vector<4x256xf32>
    %4 = arith.mulf %1, %3 : vector<4x256xf32>
    %c0_4 = arith.constant 0 : index
    %c0_5 = arith.constant 0 : index
    %5 = vector.load %arg3[%c0_4, %c0_5] : memref<4x1xf32, #tpu.memory_space<vmem>>, vector<4x1xf32>
    %6 = vector.broadcast %5 : vector<4x1xf32> to vector<4x256xf32>
    %7 = arith.addf %4, %6 : vector<4x256xf32>
    %cst = arith.constant 0.000000e+00 : f32
    %8 = vector.broadcast %cst : f32 to vector<4x256xf32>
    %9 = arith.maximumf %7, %8 : vector<4x256xf32>
    %c17_i32 = arith.constant 17 : i32
    %10 = tpu.dynamic_rotate %9 by %c17_i32 dim 1 : vector<4x256xf32>, i32 -> vector<4x256xf32>
    %c0_6 = arith.constant 0 : index
    %c0_7 = arith.constant 0 : index
    %11 = vector.load %arg6[%c0_6, %c0_7] : memref<9x256xf32, #tpu.memory_space<vmem>>, vector<1x256xf32>
    %12 = vector.broadcast %11 : vector<1x256xf32> to vector<4x256xf32>
    %13 = arith.mulf %10, %12 : vector<4x256xf32>
    %c0_8 = arith.constant 0 : index
    %c0_9 = arith.constant 0 : index
    %14 = vector.load %arg10[%c0_8, %c0_9] : memref<36x256xf32, #tpu.memory_space<vmem>>, vector<4x256xf32>
    tpu.vector_store %arg10[%c0_8, %c0_9], %13 {strides = array<i32>} : memref<36x256xf32, #tpu.memory_space<vmem>>, vector<4x256xf32>,
    %c16_i32 = arith.constant 16 : i32
    %15 = tpu.dynamic_rotate %9 by %c16_i32 dim 1 : vector<4x256xf32>, i32 -> vector<4x256xf32>
    %c1 = arith.constant 1 : index
    %c0_10 = arith.constant 0 : index
    %16 = vector.load %arg6[%c1, %c0_10] : memref<9x256xf32, #tpu.memory_space<vmem>>, vector<1x256xf32>
    %17 = vector.broadcast %16 : vector<1x256xf32> to vector<4x256xf32>
    %18 = arith.mulf %15, %17 : vector<4x256xf32>
    %c4 = arith.constant 4 : index
    %c0_11 = arith.constant 0 : index
    %19 = vector.load %arg10[%c4, %c0_11] : memref<36x256xf32, #tpu.memory_space<vmem>>, vector<4x256xf32>
    tpu.vector_store %arg10[%c4, %c0_11], %18 {strides = array<i32>} : memref<36x256xf32, #tpu.memory_space<vmem>>, vector<4x256xf32>,
    %c15_i32 = arith.constant 15 : i32
    %20 = tpu.dynamic_rotate %9 by %c15_i32 dim 1 : vector<4x256xf32>, i32 -> vector<4x256xf32>
    %c2 = arith.constant 2 : index
    %c0_12 = arith.constant 0 : index
    %21 = vector.load %arg6[%c2, %c0_12] : memref<9x256xf32, #tpu.memory_space<vmem>>, vector<1x256xf32>
    %22 = vector.broadcast %21 : vector<1x256xf32> to vector<4x256xf32>
    %23 = arith.mulf %20, %22 : vector<4x256xf32>
    %c8 = arith.constant 8 : index
    %c0_13 = arith.constant 0 : index
    %24 = vector.load %arg10[%c8, %c0_13] : memref<36x256xf32, #tpu.memory_space<vmem>>, vector<4x256xf32>
    tpu.vector_store %arg10[%c8, %c0_13], %23 {strides = array<i32>} : memref<36x256xf32, #tpu.memory_space<vmem>>, vector<4x256xf32>,
    %c1_i32 = arith.constant 1 : i32
    %25 = tpu.dynamic_rotate %9 by %c1_i32 dim 1 : vector<4x256xf32>, i32 -> vector<4x256xf32>
    %c3 = arith.constant 3 : index
    %c0_14 = arith.constant 0 : index
    %26 = vector.load %arg6[%c3, %c0_14] : memref<9x256xf32, #tpu.memory_space<vmem>>, vector<1x256xf32>
    %27 = vector.broadcast %26 : vector<1x256xf32> to vector<4x256xf32>
    %28 = arith.mulf %25, %27 : vector<4x256xf32>
    %c12 = arith.constant 12 : index
    %c0_15 = arith.constant 0 : index
    %29 = vector.load %arg10[%c12, %c0_15] : memref<36x256xf32, #tpu.memory_space<vmem>>, vector<4x256xf32>
    tpu.vector_store %arg10[%c12, %c0_15], %28 {strides = array<i32>} : memref<36x256xf32, #tpu.memory_space<vmem>>, vector<4x256xf32>,
    %c4_16 = arith.constant 4 : index
    %c0_17 = arith.constant 0 : index
    %30 = vector.load %arg6[%c4_16, %c0_17] : memref<9x256xf32, #tpu.memory_space<vmem>>, vector<1x256xf32>
    %31 = vector.broadcast %30 : vector<1x256xf32> to vector<4x256xf32>
    %32 = arith.mulf %9, %31 : vector<4x256xf32>
    %c16 = arith.constant 16 : index
    %c0_18 = arith.constant 0 : index
    %33 = vector.load %arg10[%c16, %c0_18] : memref<36x256xf32, #tpu.memory_space<vmem>>, vector<4x256xf32>
    tpu.vector_store %arg10[%c16, %c0_18], %32 {strides = array<i32>} : memref<36x256xf32, #tpu.memory_space<vmem>>, vector<4x256xf32>,
    %c255_i32 = arith.constant 255 : i32
    %34 = tpu.dynamic_rotate %9 by %c255_i32 dim 1 : vector<4x256xf32>, i32 -> vector<4x256xf32>
    %c5 = arith.constant 5 : index
    %c0_19 = arith.constant 0 : index
    %35 = vector.load %arg6[%c5, %c0_19] : memref<9x256xf32, #tpu.memory_space<vmem>>, vector<1x256xf32>
    %36 = vector.broadcast %35 : vector<1x256xf32> to vector<4x256xf32>
    %37 = arith.mulf %34, %36 : vector<4x256xf32>
    %c20 = arith.constant 20 : index
    %c0_20 = arith.constant 0 : index
    %38 = vector.load %arg10[%c20, %c0_20] : memref<36x256xf32, #tpu.memory_space<vmem>>, vector<4x256xf32>
    tpu.vector_store %arg10[%c20, %c0_20], %37 {strides = array<i32>} : memref<36x256xf32, #tpu.memory_space<vmem>>, vector<4x256xf32>,
    %c241_i32 = arith.constant 241 : i32
    %39 = tpu.dynamic_rotate %9 by %c241_i32 dim 1 : vector<4x256xf32>, i32 -> vector<4x256xf32>
    %c6 = arith.constant 6 : index
    %c0_21 = arith.constant 0 : index
    %40 = vector.load %arg6[%c6, %c0_21] : memref<9x256xf32, #tpu.memory_space<vmem>>, vector<1x256xf32>
    %41 = vector.broadcast %40 : vector<1x256xf32> to vector<4x256xf32>
    %42 = arith.mulf %39, %41 : vector<4x256xf32>
    %c24 = arith.constant 24 : index
    %c0_22 = arith.constant 0 : index
    %43 = vector.load %arg10[%c24, %c0_22] : memref<36x256xf32, #tpu.memory_space<vmem>>, vector<4x256xf32>
    tpu.vector_store %arg10[%c24, %c0_22], %42 {strides = array<i32>} : memref<36x256xf32, #tpu.memory_space<vmem>>, vector<4x256xf32>,
    %c240_i32 = arith.constant 240 : i32
    %44 = tpu.dynamic_rotate %9 by %c240_i32 dim 1 : vector<4x256xf32>, i32 -> vector<4x256xf32>
    %c7 = arith.constant 7 : index
    %c0_23 = arith.constant 0 : index
    %45 = vector.load %arg6[%c7, %c0_23] : memref<9x256xf32, #tpu.memory_space<vmem>>, vector<1x256xf32>
    %46 = vector.broadcast %45 : vector<1x256xf32> to vector<4x256xf32>
    %47 = arith.mulf %44, %46 : vector<4x256xf32>
    %c28 = arith.constant 28 : index
    %c0_24 = arith.constant 0 : index
    %48 = vector.load %arg10[%c28, %c0_24] : memref<36x256xf32, #tpu.memory_space<vmem>>, vector<4x256xf32>
    tpu.vector_store %arg10[%c28, %c0_24], %47 {strides = array<i32>} : memref<36x256xf32, #tpu.memory_space<vmem>>, vector<4x256xf32>,
    %c239_i32 = arith.constant 239 : i32
    %49 = tpu.dynamic_rotate %9 by %c239_i32 dim 1 : vector<4x256xf32>, i32 -> vector<4x256xf32>
    %c8_25 = arith.constant 8 : index
    %c0_26 = arith.constant 0 : index
    %50 = vector.load %arg6[%c8_25, %c0_26] : memref<9x256xf32, #tpu.memory_space<vmem>>, vector<1x256xf32>
    %51 = vector.broadcast %50 : vector<1x256xf32> to vector<4x256xf32>
    %52 = arith.mulf %49, %51 : vector<4x256xf32>
    %c32 = arith.constant 32 : index
    %c0_27 = arith.constant 0 : index
    %53 = vector.load %arg10[%c32, %c0_27] : memref<36x256xf32, #tpu.memory_space<vmem>>, vector<4x256xf32>
    tpu.vector_store %arg10[%c32, %c0_27], %52 {strides = array<i32>} : memref<36x256xf32, #tpu.memory_space<vmem>>, vector<4x256xf32>,
    %c0_28 = arith.constant 0 : index
    %c0_29 = arith.constant 0 : index
    %54 = vector.load %arg4[%c0_28, %c0_29] : memref<8x36xf32, #tpu.memory_space<vmem>>, vector<8x36xf32>
    %c0_30 = arith.constant 0 : index
    %c0_31 = arith.constant 0 : index
    %55 = vector.load %arg10[%c0_30, %c0_31] : memref<36x256xf32, #tpu.memory_space<vmem>>, vector<36x256xf32>
    %cst_32 = arith.constant dense<0.000000e+00> : vector<8x256xf32>
    %56 = tpu.matmul %54, %55, %cst_32 {dimension_numbers = #tpu.dot_dimension_numbers<[1], [0], [0], [1], [0, 0, 1, 1], [], []>} : vector<8x36xf32>, vector<36x256xf32>, vector<8x256xf32> -> vector<8x256xf32>
    %c0_33 = arith.constant 0 : index
    %c0_34 = arith.constant 0 : index
    %57 = vector.load %arg5[%c0_33, %c0_34] : memref<8x1xf32, #tpu.memory_space<vmem>>, vector<8x1xf32>
    %58 = vector.broadcast %57 : vector<8x1xf32> to vector<8x256xf32>
    %59 = arith.addf %56, %58 : vector<8x256xf32>
    %c0_35 = arith.constant 0 : index
    %c0_36 = arith.constant 0 : index
    %c0_37 = arith.constant 0 : index
    %60 = vector.load %arg7[%c0_35, %c0_36, %c0_37] : memref<1x8x256xf32, #tpu.memory_space<vmem>>, vector<1x8x256xf32>
    %61 = vector.shape_cast %60 : vector<1x8x256xf32> to vector<8x256xf32>
    %62 = vector.shape_cast %59 : vector<8x256xf32> to vector<1x8x256xf32>
    tpu.vector_store %arg7[%c0_35, %c0_36, %c0_37], %62 {strides = array<i32>} : memref<1x8x256xf32, #tpu.memory_space<vmem>>, vector<1x8x256xf32>,
    %cst_38 = arith.constant dense<0.000000e+00> : vector<8xf32>
    %63 = vector.multi_reduction <add>, %59, %cst_38 [1] : vector<8x256xf32> to vector<8xf32>
    %64 = vector.shape_cast %63 : vector<8xf32> to vector<8x1xf32>
    %c0_39 = arith.constant 0 : index
    %c0_40 = arith.constant 0 : index
    %c0_41 = arith.constant 0 : index
    %65 = vector.load %arg8[%c0_39, %c0_40, %c0_41] : memref<1x8x1xf32, #tpu.memory_space<vmem>>, vector<1x8x1xf32>
    %66 = vector.shape_cast %65 : vector<1x8x1xf32> to vector<8x1xf32>
    %67 = vector.shape_cast %64 : vector<8x1xf32> to vector<1x8x1xf32>
    tpu.vector_store %arg8[%c0_39, %c0_40, %c0_41], %67 {strides = array<i32>} : memref<1x8x1xf32, #tpu.memory_space<vmem>>, vector<1x8x1xf32>,
    %68 = arith.mulf %59, %59 : vector<8x256xf32>
    %cst_42 = arith.constant dense<0.000000e+00> : vector<8xf32>
    %69 = vector.multi_reduction <add>, %68, %cst_42 [1] : vector<8x256xf32> to vector<8xf32>
    %70 = vector.shape_cast %69 : vector<8xf32> to vector<8x1xf32>
    %c0_43 = arith.constant 0 : index
    %c0_44 = arith.constant 0 : index
    %c0_45 = arith.constant 0 : index
    %71 = vector.load %arg9[%c0_43, %c0_44, %c0_45] : memref<1x8x1xf32, #tpu.memory_space<vmem>>, vector<1x8x1xf32>
    %72 = vector.shape_cast %71 : vector<1x8x1xf32> to vector<8x1xf32>
    %73 = vector.shape_cast %70 : vector<8x1xf32> to vector<1x8x1xf32>
    tpu.vector_store %arg9[%c0_43, %c0_44, %c0_45], %73 {strides = array<i32>} : memref<1x8x1xf32, #tpu.memory_space<vmem>>, vector<1x8x1xf32>,
    return
  }
  func.func @transform_0(%arg0: i32) -> (i32, i32, i32) {
    %c0_i32 = arith.constant 0 : i32
    %c0_i32_0 = arith.constant 0 : i32
    %c0_i32_1 = arith.constant 0 : i32
    return %arg0, %c0_i32, %c0_i32_0 : i32, i32, i32
  }
  func.func @transform_1(%arg0: i32) -> (i32, i32) {
    %c0_i32 = arith.constant 0 : i32
    %c0_i32_0 = arith.constant 0 : i32
    %c0_i32_1 = arith.constant 0 : i32
    return %c0_i32, %c0_i32_0 : i32, i32
  }
  func.func @transform_2(%arg0: i32) -> (i32, i32) {
    %c0_i32 = arith.constant 0 : i32
    %c0_i32_0 = arith.constant 0 : i32
    %c0_i32_1 = arith.constant 0 : i32
    return %c0_i32, %c0_i32_0 : i32, i32
  }
  func.func @transform_3(%arg0: i32) -> (i32, i32) {
    %c0_i32 = arith.constant 0 : i32
    %c0_i32_0 = arith.constant 0 : i32
    %c0_i32_1 = arith.constant 0 : i32
    return %c0_i32, %c0_i32_0 : i32, i32
  }
  func.func @transform_4(%arg0: i32) -> (i32, i32) {
    %c0_i32 = arith.constant 0 : i32
    %c0_i32_0 = arith.constant 0 : i32
    %c0_i32_1 = arith.constant 0 : i32
    return %c0_i32, %c0_i32_0 : i32, i32
  }
  func.func @transform_5(%arg0: i32) -> (i32, i32) {
    %c0_i32 = arith.constant 0 : i32
    %c0_i32_0 = arith.constant 0 : i32
    %c0_i32_1 = arith.constant 0 : i32
    return %c0_i32, %c0_i32_0 : i32, i32
  }
  func.func @transform_6(%arg0: i32) -> (i32, i32, i32) {
    %c0_i32 = arith.constant 0 : i32
    %c0_i32_0 = arith.constant 0 : i32
    %c0_i32_1 = arith.constant 0 : i32
    return %arg0, %c0_i32, %c0_i32_0 : i32, i32, i32
  }
  func.func @transform_7(%arg0: i32) -> (i32, i32, i32) {
    %c0_i32 = arith.constant 0 : i32
    %c0_i32_0 = arith.constant 0 : i32
    %c0_i32_1 = arith.constant 0 : i32
    return %arg0, %c0_i32, %c0_i32_0 : i32, i32, i32
  }
  func.func @transform_8(%arg0: i32) -> (i32, i32, i32) {
    %c0_i32 = arith.constant 0 : i32
    %c0_i32_0 = arith.constant 0 : i32
    %c0_i32_1 = arith.constant 0 : i32
    return %arg0, %c0_i32, %c0_i32_0 : i32, i32, i32
  }
}

</mosaic_0001>

<bundles_post_ra>
// kernel: continus_paralle_conv_forward.2
= control target key start
LH: loop header
LB: loop body
LE: loop exit
PB: predicated region body
PF: predicated region fallthrough
CT: control target
= control target key end

     0   :  { %s885_s27 = smov 0   ;;  %s973_s0 = inlined_call_operand.vmem [shape: f32[2,4,256], index: 0, kind: input, shape index: {}]   ;;  %s974_s1 = inlined_call_operand.vmem [shape: f32[4,1], index: 1, kind: input, shape index: {}]   ;;  %s975_s2 = inlined_call_operand.vmem [shape: f32[4,1], index: 2, kind: input, shape index: {}]   ;;  %s976_s3 = inlined_call_operand.vmem [shape: f32[8,36], index: 3, kind: input, shape index: {}]   ;;  %s977_s4 = inlined_call_operand.vmem [shape: f32[8,1], index: 4, kind: input, shape index: {}]   ;;  %s978_s5 = inlined_call_operand.vmem [shape: f32[9,256], index: 5, kind: input, shape index: {}]   ;;  %s979_s6 = inlined_call_operand.vmem [shape: f32[2,8,256], index: 6, kind: output, shape index: {0}]   ;;  %s980_s7 = inlined_call_operand.vmem [shape: f32[2,8,1], index: 7, kind: output, shape index: {1}]   ;;  %s981_s8 = inlined_call_operand.vmem [shape: f32[2,8,1], index: 8, kind: output, shape index: {2}]  }
   0x1 LB: > { %s776_s28 = sadd.s32 4294967295, %s828_s27   ;;  %p780_p0 = scmp.ge.s32.totalorder %s828_s27, 1  ;;  %s828_s27 = sphi %s885_s27, %s19_s27  }
   0x2   : > { %p267_p1 = scmp.lt.s32.totalorder %s828_s27, 3 }
   0x4   : > { %p268_p2 = pnand %p780_p0, %p267_p1 }
   0x5   : > { %p309_p3 = scmp.lt.s32.totalorder (!%p268_p2), %s776_s28, 1  ;;  %s832_s17 = smov (!%p268_p2), 16  }
   0x6   : > { %271 = sbr.rel (%p268_p2) target bundleno = 601 (0x259), region = 44  ;;  %s833_s18 = smov (!%p268_p2), 15  }
   0x7   : > { %s834_s19 = smov (!%p268_p2), 1   ;;  %s835_s20 = smov (!%p268_p2), 127  }
   0x8   : > { %s836_s21 = smov (!%p268_p2), 113   ;;  %s837_s22 = smov (!%p268_p2), 112  }
   0x9   : > { %s838_s25 = smov (!%p268_p2), 111   ;;  %s839_s26 = smov (!%p268_p2), 17  }
   0xb   : > { %v328_v0 = vld [vmem:[%s974_s1] sm:$0xf]  ;;  %v830_v1 = vmov 0   ;;  %s983_s28 = smov (!%p309_p3, %s776_s28), 1  ;;  %v831_v3 = vmov 839922192   ;;  %v361_v39 = vlaneseq }
   0xc   : > { %821 = vset.pattern.permute.xlu0 %v830_v1  ;;  %v339_v2 = vld [vmem:[%s975_s2] sm:$0xf]  ;;  %v334_v4 = vunpack.c.l.s4 %v831_v3  ;;  %s902_s11 = sshll.u32 %s983_s28, 3  ;;  %v790_v16 = vld [vmem:[%s978_s5 + $0x4] ss:$8 sm:$0x3] }
   0xd   : > { %331 = vperm.xlu0 %821, %v328_v0   ;;  %s313_s14 = scalar_lea.vmem %s973_s0, %s902_s11  ;;  %v461_v19 = vperm.slane %v790_v16, 1  ;;  %v460_v20 = vperm.slane %v790_v16, 0  ;;  %vm463_vm0 = vcmask 1043456   ;;  %v590_v36 = vld [vmem:[%s977_s4] sm:$0xff]  ;;  %v915_v40 = vand.u32 127, %v361_v39  ;;  %s322_s12 = scalar_lea.vmem %s980_s7, %s902_s11 }
   0xe   : > { %v335_v6 = vunpack.c.0.s8 %v334_v4  ;;  %v327_v8 = vld [vmem:[%s313_s14] sm:$0xff]  ;;  %vm596_vm9 = vcmask 293888   ;;  %vm651_vm10 = vcmask 7168   ;;  %s326_s15 = scalar_lea.vmem %s981_s8, %s902_s11 }
   0xf   : > { %v462_v21 = vrot.slane %v461_v19, 4  ;;  %v787_v41 = vld [vmem:[%s978_s5 + $0x1] ss:$8 sm:$0x3]  ;;  %vm385_vm1 = vcmp.lt.s32.totalorder %v915_v40, 16  ;;  %vm437_vm2 = vcmp.lt.s32.totalorder %v915_v40, 1 }
  0x10   : > { %v391_v42 = vperm.slane %v787_v41, 0  ;;  %v392_v43 = vperm.slane %v787_v41, 1  ;;  %v789_v53 = vld [vmem:[%s978_s5 + $0x3] ss:$8 sm:$0x3]  ;;  %vm484_vm3 = vcmp.lt.s32.totalorder %v915_v40, 127 }
  0x11   : > { %v464_v24 = vsel %vm463_vm0, %v460_v20, %v462_v21  ;;  %v443_v54 = vperm.slane %v789_v53, 0  ;;  %v444_v55 = vperm.slane %v789_v53, 1  ;;  %v791_v1 = vld [vmem:[%s978_s5 + $0x5] ss:$8 sm:$0x3]  ;;  %vm513_vm4 = vcmp.lt.s32.totalorder %v915_v40, 113 }
  0x12   : > { %v491_v3 = vperm.slane %v791_v1, 1  ;;  %vm565_vm5 = vcmp.lt.s32.totalorder %v915_v40, 111  ;;  %vm414_vm6 = vcmp.lt.s32.totalorder %v915_v40, 15  ;;  %vm536_vm7 = vcmp.lt.s32.totalorder %v915_v40, 112 }
  0x13   : > { %vm363_vm8 = vcmp.lt.s32.totalorder %v915_v40, 17 }
  0x15   : > { %342 = vperm.xlu0 %821, %v339_v2   ;;  %v490_v2 = vperm.slane %v791_v1, 0  ;;  %v579_v1 = vld [vmem:[%s976_s3] sm:$0xff] }
  0x7f   : > { %v332_v5 = vpop.permute.xlu0 %331 }
  0x80   : > { %v336_v7 = vperm.slane %v332_v5, %v335_v6 }
  0x82   : > { %v338_v10 = vmul.f32 %v336_v7, %v327_v8 }
  0x87   : > { %v343_v9 = vpop.permute.xlu0 %342 }
  0x88   : > { %v347_v11 = vperm.slane %v343_v9, %v335_v6 }
  0x8a   : > { %v349_v12 = vadd.f32 %v347_v11, %v338_v10  ;;  %v792_v11 = vld [vmem:[%s978_s5 + $0x6] ss:$8 sm:$0x3] }
  0x8b   : > { %v520_v16 = vperm.slane %v792_v11, 1 }
  0x8c   : > { %v350_v13 = vmax.f32 %v349_v12, 0.0 }
  0x8e   : > { %352 = vst [vmem:[#allocation1] ss:$2 sm:$0xff] %v350_v13  ;;  %v466_v25 = vmul.f32 %v464_v24, %v350_v13 }
  0x95   : > { %v353_v14 = vld.sshfl [vmem:[#allocation1] sm:$0xff pattern:$0x75316420]  ;;  %v354_v15 = vld.sshfl [vmem:[#allocation1 + $0x8] sm:$0xff pattern:$0x75316420] }
  0x96   : > { %376 = vst [vmem:[#allocation1] ss:$2 sm:$0xff] %v350_v13 }
  0x9d   : > { %v378_v17 = vld.sshfl [vmem:[#allocation1 + $0x8] sm:$0xff pattern:$0x75316420]  ;;  %v377_v18 = vld.sshfl [vmem:[#allocation1] sm:$0xff pattern:$0x75316420] }
  0x9e   : > { %383 = vrot.lane.b32.xlu1 %v378_v17, %s832_s17  ;;  %381 = vrot.lane.b32.xlu0 %v377_v18, %s832_s17  ;;  %405 = vst [vmem:[#allocation1] ss:$2 sm:$0xff] %v350_v13 }
  0xa5   : > { %v406_v22 = vld.sshfl [vmem:[#allocation1] sm:$0xff pattern:$0x75316420]  ;;  %v407_v23 = vld.sshfl [vmem:[#allocation1 + $0x8] sm:$0xff pattern:$0x75316420] }
  0xa6   : > { %410 = vrot.lane.b32.xlu2 %v406_v22, %s833_s18  ;;  %428 = vst [vmem:[#allocation1] ss:$2 sm:$0xff] %v350_v13 }
  0xad   : > { %v430_v26 = vld.sshfl [vmem:[#allocation1 + $0x8] sm:$0xff pattern:$0x75316420]  ;;  %v429_v27 = vld.sshfl [vmem:[#allocation1] sm:$0xff pattern:$0x75316420] }
  0xae   : > { %435 = vrot.lane.b32.xlu2 %v430_v26, %s834_s19  ;;  %433 = vrot.lane.b32.xlu1 %v429_v27, %s834_s19  ;;  %468 = vst [vmem:[#allocation1] ss:$2 sm:$0xff] %v466_v25 }
  0xb5   : > { %v469_v28 = vld.sshfl [vmem:[#allocation1] sm:$0xff pattern:$0x75316420]  ;;  %v470_v29 = vld.sshfl [vmem:[#allocation1 + $0x8] sm:$0xff pattern:$0x75316420] }
  0xb6   : > { %473 = vst [vmem:[#allocation2 + $0x48] sm:$0xf] %v469_v28 }
  0xb7   : > { %474 = vst [vmem:[#allocation2 + $0x28] sm:$0xf] %v470_v29  ;;  %v788_v29 = vld [vmem:[%s978_s5 + $0x2] ss:$8 sm:$0x3] }
  0xb8   : > { %475 = vst [vmem:[#allocation1] ss:$2 sm:$0xff] %v350_v13 }
  0xbf   : > { %v477_v30 = vld.sshfl [vmem:[#allocation1 + $0x8] sm:$0xff pattern:$0x75316420]  ;;  %v476_v31 = vld.sshfl [vmem:[#allocation1] sm:$0xff pattern:$0x75316420] }
  0xc0   : > { %482 = vrot.lane.b32.xlu1 %v477_v30, %s835_s20  ;;  %480 = vrot.lane.b32.xlu0 %v476_v31, %s835_s20  ;;  %504 = vst [vmem:[#allocation1] ss:$2 sm:$0xff] %v350_v13  ;;  %v420_v30 = vperm.slane %v788_v29, 0  ;;  %v421_v31 = vperm.slane %v788_v29, 1 }
  0xc7   : > { %v506_v32 = vld.sshfl [vmem:[#allocation1 + $0x8] sm:$0xff pattern:$0x75316420]  ;;  %v505_v33 = vld.sshfl [vmem:[#allocation1] sm:$0xff pattern:$0x75316420] }
  0xc8   : > { %511 = vrot.lane.b32.xlu0 %v506_v32, %s836_s21  ;;  %509 = vrot.lane.b32.xlu2 %v505_v33, %s836_s21  ;;  %527 = vst [vmem:[#allocation1] ss:$2 sm:$0xff] %v350_v13 }
  0xcf   : > { %v528_v34 = vld.sshfl [vmem:[#allocation1] sm:$0xff pattern:$0x75316420]  ;;  %v529_v35 = vld.sshfl [vmem:[#allocation1 + $0x8] sm:$0xff pattern:$0x75316420] }
  0xd0   : > { %412 = vrot.lane.b32.xlu0 %v407_v23, %s833_s18  ;;  %532 = vrot.lane.b32.xlu1 %v528_v34, %s837_s22  ;;  %556 = vst [vmem:[#allocation1] ss:$2 sm:$0xff] %v350_v13 }
  0xd7   : > { %v557_v37 = vld.sshfl [vmem:[#allocation1] sm:$0xff pattern:$0x75316420]  ;;  %v558_v38 = vld.sshfl [vmem:[#allocation1 + $0x8] sm:$0xff pattern:$0x75316420] }
  0xd8   : > { %593 = vperm.xlu0 %821, %v590_v36   ;;  %534 = vrot.lane.b32.xlu1 %v529_v35, %s837_s22 }
  0xd9   : > { %561 = vrot.lane.b32.xlu2 %v557_v37, %s838_s25 }
  0xe0   : > { %357 = vrot.lane.b32.xlu1 %v353_v14, %s839_s26  ;;  %v794_v14 = vld [vmem:[%s978_s5 + $0x10] ss:$8 sm:$0x3] }
  0xe1   : > { %563 = vrot.lane.b32.xlu2 %v558_v38, %s838_s25  ;;  %v571_v17 = vperm.slane %v794_v14, 0  ;;  %v572_v18 = vperm.slane %v794_v14, 1  ;;  %v793_v38 = vld [vmem:[%s978_s5 + $0x7] ss:$8 sm:$0x3] }
  0xe9   : > { %359 = vrot.lane.b32.xlu2 %v354_v15, %s839_s26  ;;  %v519_v15 = vperm.slane %v792_v11, 0  ;;  %s802_s26 = sshll.u32 %s983_s28, 4 }
  0xea   : > { %s318_s9 = scalar_lea.vmem %s979_s6, %s802_s26 }
 0x100   : > { %v921_v52 = vpop.permute.xlu2 %410 }
 0x108   : > { %v436_v56 = vpop.permute.xlu2 %435 }
 0x110   : > { %v384_v44 = vpop.permute.xlu1 %383  ;;  %v382_v45 = vpop.permute.xlu0 %381 }
 0x111   : > { %v386_v46 = vsel %vm385_vm1, %v382_v45, %v384_v44  ;;  %v387_v47 = vsel %vm385_vm1, %v384_v44, %v382_v45 }
 0x112   : > { %v395_v48 = vmul.f32 %v391_v42, %v387_v47  ;;  %v396_v49 = vmul.f32 %v392_v43, %v386_v46  ;;  %v542_v42 = vperm.slane %v793_v38, 0  ;;  %v543_v43 = vperm.slane %v793_v38, 1 }
 0x114   : > { %v399_v50 = vrot.slane %v395_v48, 4  ;;  %v400_v51 = vrot.slane %v396_v49, 4  ;;  %v366_v49 = vld [vmem:[%s978_s5] ss:$8 sm:$0x3] }
 0x115   : > { %v369_v53 = vperm.slane %v366_v49, 1 }
 0x116   : > { %403 = vst [vmem:[#allocation2 + $0x30] sm:$0xf0] %v399_v50 }
 0x117   : > { %404 = vst [vmem:[#allocation2] sm:$0xf0] %v400_v51 }
 0x120   : > { %v434_v57 = vpop.permute.xlu1 %433 }
 0x121   : > { %v438_v58 = vsel %vm437_vm2, %v434_v57, %v436_v56  ;;  %v439_v59 = vsel %vm437_vm2, %v436_v56, %v434_v57 }
 0x122   : > { %v447_v60 = vmul.f32 %v443_v54, %v439_v59  ;;  %v448_v61 = vmul.f32 %v444_v55, %v438_v58  ;;  %v510_v0 = vpop.permute.xlu2 %509 }
 0x124   : > { %v451_v62 = vrot.slane %v447_v60, 4  ;;  %v452_v63 = vrot.slane %v448_v61, 4 }
 0x126   : > { %455 = vst [vmem:[#allocation2 + $0x18] sm:$0xf0] %v451_v62 }
 0x127   : > { %456 = vst [vmem:[#allocation2 + $0x10] sm:$0xf0] %v452_v63 }
 0x132   : > { %v483_v4 = vpop.permute.xlu1 %482  ;;  %v481_v5 = vpop.permute.xlu0 %480 }
 0x133   : > { %v485_v6 = vsel %vm484_vm3, %v481_v5, %v483_v4  ;;  %v486_v7 = vsel %vm484_vm3, %v483_v4, %v481_v5  ;;  %v562_v8 = vpop.permute.xlu2 %561 }
 0x134   : > { %v494_v9 = vmul.f32 %v490_v2, %v485_v6  ;;  %v495_v10 = vmul.f32 %v491_v3, %v486_v7 }
 0x136   : > { %v498_v12 = vrot.slane %v494_v9, 4  ;;  %v499_v13 = vrot.slane %v495_v10, 4 }
 0x138   : > { %502 = vst [vmem:[#allocation2 + $0x48] sm:$0xf0] %v498_v12 }
 0x139   : > { %503 = vst [vmem:[#allocation2 + $0x28] sm:$0xf0] %v499_v13 }
 0x13a   : > { %v512_v19 = vpop.permute.xlu0 %511 }
 0x13b   : > { %v514_v20 = vsel %vm513_vm4, %v510_v0, %v512_v19  ;;  %v515_v21 = vsel %vm513_vm4, %v512_v19, %v510_v0  ;;  %v564_v22 = vpop.permute.xlu2 %563 }
 0x13c   : > { %v523_v23 = vmul.f32 %v519_v15, %v514_v20  ;;  %v524_v24 = vmul.f32 %v520_v16, %v515_v21  ;;  %v566_v25 = vsel %vm565_vm5, %v562_v8, %v564_v22  ;;  %v567_v26 = vsel %vm565_vm5, %v564_v22, %v562_v8 }
 0x13d   : > { %v575_v27 = vmul.f32 %v571_v17, %v566_v25  ;;  %v576_v28 = vmul.f32 %v572_v18, %v567_v26 }
 0x13e   : > { %525 = vst [vmem:[#allocation2 + $0x8] sm:$0xf] %v523_v23 }
 0x13f   : > { %526 = vst [vmem:[#allocation2 + $0x20] sm:$0xf] %v524_v24  ;;  %v584_v62 = vld [vmem:[#allocation2 + $0x48] sm:$0xff] }
 0x140   : > { %577 = vst [vmem:[#allocation2 + $0x40] sm:$0xf] %v575_v27  ;;  %v585_v63 = vld [vmem:[#allocation2 + $0x28] sm:$0xff] }
 0x141   : > { %578 = vst [vmem:[#allocation2 + $0x38] sm:$0xf] %v576_v28 }
 0x142   : > { %v413_v32 = vpop.permute.xlu0 %412  ;;  %v533_v33 = vpop.permute.xlu1 %532 }
 0x143   : > { %v415_v34 = vsel %vm414_vm6, %v921_v52, %v413_v32  ;;  %v416_v35 = vsel %vm414_vm6, %v413_v32, %v921_v52  ;;  %v368_v52 = vperm.slane %v366_v49, 0  ;;  %v360_v54 = vpop.permute.xlu2 %359 }
 0x144   : > { %v424_v36 = vmul.f32 %v420_v30, %v416_v35  ;;  %v425_v37 = vmul.f32 %v421_v31, %v415_v34 }
 0x146   : > { %426 = vst [vmem:[#allocation2 + $0x18] sm:$0xf] %v424_v36 }
 0x147   : > { %427 = vst [vmem:[#allocation2 + $0x10] sm:$0xf] %v425_v37  ;;  %v588_v39 = vld [vmem:[#allocation2 + $0x40] sm:$0xf] }
 0x148   : > { %795 = vmatpush.msk.msra.mxu0 %vm463_vm0, %v588_v39  ;;  %v589_v41 = vld [vmem:[#allocation2 + $0x38] sm:$0xf] }
 0x149   : > { %797 = vmatpush.msk.msra.mxu1 %vm463_vm0, %v589_v41 }
 0x14a   : > { %v535_v44 = vpop.permute.xlu1 %534  ;;  %v594_v4 = vpop.permute.xlu0 %593 }
 0x14b   : > { %v537_v45 = vsel %vm536_vm7, %v533_v33, %v535_v44  ;;  %v538_v46 = vsel %vm536_vm7, %v535_v44, %v533_v33 }
 0x14c   : > { %v546_v47 = vmul.f32 %v542_v42, %v537_v45  ;;  %v547_v48 = vmul.f32 %v543_v43, %v538_v46 }
 0x14d   : > { %v582_v40 = vld [vmem:[#allocation2 + $0x18] sm:$0xff] }
 0x14e   : > { %v550_v50 = vrot.slane %v546_v47, 4  ;;  %v551_v51 = vrot.slane %v547_v48, 4  ;;  %v583_v0 = vld [vmem:[#allocation2 + $0x10] sm:$0xff] }
 0x150   : > { %554 = vst [vmem:[#allocation2 + $0x8] sm:$0xf0] %v550_v50 }
 0x151   : > { %555 = vst [vmem:[#allocation2 + $0x20] sm:$0xf0] %v551_v51 }
 0x152   : > { %v358_v55 = vpop.permute.xlu1 %357 }
 0x153   : > { %v364_v56 = vsel %vm363_vm8, %v358_v55, %v360_v54  ;;  %v365_v57 = vsel %vm363_vm8, %v360_v54, %v358_v55 }
 0x154   : > { %v372_v58 = vmul.f32 %v368_v52, %v365_v57  ;;  %v373_v59 = vmul.f32 %v369_v53, %v364_v56 }
 0x156   : > { %374 = vst [vmem:[#allocation2 + $0x30] sm:$0xf] %v372_v58 }
 0x157   : > { %375 = vst [vmem:[#allocation2] sm:$0xf] %v373_v59  ;;  %v586_v60 = vld [vmem:[#allocation2 + $0x8] sm:$0xff] }
 0x158   : > { %618 = vmatpush.msra.mxu0 %v586_v60  ;;  %v587_v61 = vld [vmem:[#allocation2 + $0x20] sm:$0xff] }
 0x159   : > { %638 = vmatpush.msra.mxu1 %v587_v61 }
 0x15a   : > { %619 = vmatpush.msra.mxu0 %v584_v62 }
 0x15b   : > { %639 = vmatpush.msra.mxu1 %v585_v63 }
 0x15c   : > { %620 = vmatpush.msra.mxu0 %v582_v40 }
 0x15d   : > { %640 = vmatpush.msra.mxu1 %v583_v0  ;;  %v580_v2 = vld [vmem:[#allocation2 + $0x30] sm:$0xff] }
 0x15e   : > { %621 = vmatpush.msra.mxu0 %v580_v2  ;;  %v581_v3 = vld [vmem:[#allocation2] sm:$0xff] }
 0x15f   : > { %641 = vmatpush.msra.mxu1 %v581_v3  ;;  %796 = vmatmul.msk.f32.vlgmr.msra.gmra.mxu0 %vm596_vm9, %v579_v1 }
 0x160   : > { %798 = vmatmul.msk.f32.vlgmr.msra.gmra.mxu1 %vm596_vm9, %v579_v1 }
 0x1dc   : > { %v623_v5 = vpop.f32.mrf.mxu0 }
 0x1dd   : > { %v624_v6 = vadd.f32 %v623_v5, %v594_v4  ;;  %v643_v7 = vpop.f32.mrf.mxu1 }
 0x1de   : > { %v644_v8 = vadd.f32 %v643_v7, %v594_v4 }
 0x1df   : > { %646 = vst [vmem:[%s318_s9] sm:$0xff] %v624_v6  ;;  %v653_v9 = vmul.f32 %v624_v6, %v624_v6 }
 0x1e0   : > { %647 = vst [vmem:[%s318_s9 + $0x8] sm:$0xff] %v644_v8  ;;  %v648_v10 = vadd.f32 %v644_v8, %v624_v6  ;;  %v654_v11 = vmul.f32 %v644_v8, %v644_v8 }
 0x1e2   : > { %649 = vadd.xlane.f32.xlu1 %v648_v10  ;;  %v655_v12 = vadd.f32 %v654_v11, %v653_v9 }
 0x1e4   : > { %656 = vadd.xlane.f32.xlu2 %v655_v12 }
 0x255   : > { %v650_v13 = vpop.xlane.xlu1 %649 }
 0x256   : > { %652 = vst.msk [vmem:[%s322_s12] sm:$0xff] %vm651_vm10, %v650_v13 }
 0x257   : > { %v657_v14 = vpop.xlane.xlu2 %656 }
 0x258   : > { %658 = vst.msk [vmem:[%s326_s15] sm:$0xff] %vm651_vm10, %v657_v14 }
 0x259 PF: > { %s19_s27 = sadd.s32 1, %s828_s27  }
 0x25a   : > { %p16_p4 = scmp.ge.s32.totalorder %s19_s27, 4  }
 0x25c   :  { %18 = sbr.rel (!%p16_p4) target bundleno = 1 (0x1), region = 106 }

// kernel: continus_paralle_conv_forward.3
= control target key start
LH: loop header
LB: loop body
LE: loop exit
PB: predicated region body
PF: predicated region fallthrough
CT: control target
= control target key end

     0   :  { %s1170_s0 = inlined_call_operand.vmem [shape: f32[2,8,256], index: 0, kind: input, shape index: {}]   ;;  %s1171_s1 = inlined_call_operand.vmem [shape: f32[8,1], index: 1, kind: input, shape index: {}]   ;;  %s1172_s2 = inlined_call_operand.vmem [shape: f32[8,1], index: 2, kind: input, shape index: {}]   ;;  %s1173_s3 = inlined_call_operand.vmem [shape: f32[8,72], index: 3, kind: input, shape index: {}]   ;;  %s1174_s4 = inlined_call_operand.vmem [shape: f32[8,1], index: 4, kind: input, shape index: {}]   ;;  %s1175_s5 = inlined_call_operand.vmem [shape: f32[9,256], index: 5, kind: input, shape index: {}]   ;;  %s1176_s6 = inlined_call_operand.vmem [shape: f32[2,8,256], index: 6, kind: output, shape index: {0}]   ;;  %s1177_s7 = inlined_call_operand.hbm [shape: f32[2,8,1], index: 7, kind: output, shape index: {1}]   ;;  %s1178_s8 = inlined_call_operand.hbm [shape: f32[2,8,1], index: 8, kind: output, shape index: {2}]  }
   0x1   :  { %1179 = sst [smem:[#allocation9_spill]] %s1170_s0 }
   0x2   :  { %1180 = sst [smem:[#allocation10_spill]] %s1171_s1 }
   0x3   :  { %14 = vsyncpa [#allocation4], 0 }
   0x4   :  { %16 = vsyncpa [#allocation4 + $0x1], 0 }
   0x5   :  { %17 = vsyncpa [#allocation6], 0 }
   0x6   :  { %19 = vsyncpa [#allocation6 + $0x1], 0  ;;  %s977_s27 = smov 0   ;;  %s979_s28 = smov 0  }
   0x7   :  { %s981_s29 = smov 0   ;;  %s983_s30 = smov 0  }
   0x8 LB: > { %s998_s9 = sadd.s32 4294967295, %s921_s30   ;;  %s745_s10 = sadd.s32 4294967294, %s921_s30   ;;  %s921_s30 = sphi %s983_s30, %s1188_s30   ;;  %s917_s29 = sphi %s981_s29, %s1187_s29   ;;  %s913_s28 = sphi %s979_s28, %s1186_s28   ;;  %s909_s27 = sphi %s977_s27, %s1185_s27  }
   0x9   : > { %s1002_s11 = sadd.s32 1, %s921_s30   ;;  %s189_s12 = sadd.s32 1, %s917_s29 }
   0xa   : > { %s186_s13 = ssub.s32 %s921_s30, %s1002_s11  ;;  %p199_p0 = scmp.ne.s32.totalorder %s917_s29, %s913_s28 }
   0xb   : > { %p187_p1 = scmp.eq.s32.totalorder %s186_s13, 0  ;;  %p200_p2 = scmp.eq.s32.totalorder %s998_s9, 1 }
   0xc   : > { %p205_p3 = scmp.ne.s32.totalorder %s913_s28, %s909_s27  ;;  %p206_p4 = scmp.eq.s32.totalorder %s745_s10, 1 }
   0xd   : > { %s1013_s14 = scalar_select %p187_p1, %s917_s29, %s189_s12  }
   0xe   : > { %p1015_p5 = por %p200_p2, %p199_p0  ;;  %p1019_p6 = por %p206_p4, %p205_p3 }
   0xf   : > { %p748_p7 = scmp.ge.s32.totalorder %s921_s30, 1  ;;  %p273_p8 = scmp.lt.s32.totalorder %s921_s30, 3 }
  0x11   : > { %p274_p9 = pnand %p748_p7, %p273_p8 }
  0x12   : > { %s1183_s1 = sld [smem:[#allocation10_spill]] (!%p274_p9)  ;;  %p317_p10 = scmp.lt.s32.totalorder (!%p274_p9), %s998_s9, 1 }
  0x13   : > { %277 = sbr.rel (%p274_p9) target bundleno = 575 (0x23f), region = 44  ;;  %s1184_s0 = sld [smem:[#allocation9_spill]] (!%p274_p9) }
  0x14   : > { %s924_s26 = smov (!%p274_p9), 113   ;;  %s925_s10 = smov (!%p274_p9), 112  }
  0x15   : > { %s926_s12 = smov (!%p274_p9), 111   ;;  %s927_s13 = smov (!%p274_p9), 127  }
  0x16   : > { %s928_s17 = smov (!%p274_p9), 15   ;;  %s929_s18 = smov (!%p274_p9), 16  }
  0x17   : > { %s930_s19 = smov (!%p274_p9), 1   ;;  %s931_s24 = smov (!%p274_p9), 17  }
  0x18   : > { %v329_v0 = vld [vmem:[%s1183_s1] sm:$0xff]  ;;  %v923_v1 = vmov 0   ;;  %s1033_s21 = scalar_select %p317_p10, %s998_s9, 1  ;;  %v351_v15 = vlaneseq  ;;  %v762_v20 = vld [vmem:[%s1175_s5 + $0x10] ss:$8 sm:$0x3] }
  0x19   : > { %826 = vset.pattern.permute.xlu0 %v923_v1  ;;  %v337_v2 = vld [vmem:[%s1172_s2] sm:$0xff]  ;;  %v495_v22 = vperm.slane %v762_v20, 0  ;;  %v496_v23 = vperm.slane %v762_v20, 1  ;;  %vm528_vm8 = vcmask 588800   ;;  %vm577_vm9 = vcmask 7168  }
  0x1a   : > { %332 = vperm.xlu0 %826, %v329_v0   ;;  %s771_s22 = sshll.u32 %s1033_s21, 4  ;;  %v522_v13 = vld [vmem:[%s1174_s4] sm:$0xff]  ;;  %v1064_v19 = vand.u32 127, %v351_v15 }
  0x1b   : > { %s321_s25 = scalar_lea.vmem %s1184_s0, %s771_s22  ;;  %v761_v21 = vld [vmem:[%s1175_s5 + $0x7] ss:$8 sm:$0x3]  ;;  %v760_v35 = vld [vmem:[%s1175_s5 + $0x6] ss:$8 sm:$0x3] }
  0x1c   : > { %v327_v4 = vld [vmem:[%s321_s25] sm:$0xff]  ;;  %v328_v8 = vld [vmem:[%s321_s25 + $0x8] sm:$0xff]  ;;  %vm471_vm0 = vcmp.lt.s32.totalorder %v1064_v19, 112  ;;  %vm489_vm1 = vcmp.lt.s32.totalorder %v1064_v19, 111  ;;  %v477_v25 = vperm.slane %v761_v21, 0  ;;  %v478_v26 = vperm.slane %v761_v21, 1  ;;  %s326_s25 = scalar_lea.vmem %s1176_s6, %s771_s22 }
  0x1d   : > { %v759_v38 = vld [vmem:[%s1175_s5 + $0x5] ss:$8 sm:$0x3]  ;;  %v758_v39 = vld [vmem:[%s1175_s5 + $0x4] ss:$8 sm:$0x3] }
  0x1e   : > { %vm435_vm2 = vcmp.lt.s32.totalorder %v1064_v19, 127  ;;  %vm453_vm3 = vcmp.lt.s32.totalorder %v1064_v19, 113  ;;  %v459_v40 = vperm.slane %v760_v35, 0  ;;  %v460_v41 = vperm.slane %v760_v35, 1 }
  0x1f   : > { %v441_v43 = vperm.slane %v759_v38, 0  ;;  %v442_v44 = vperm.slane %v759_v38, 1  ;;  %v424_v45 = vperm.slane %v758_v39, 1  ;;  %v423_v52 = vperm.slane %v758_v39, 0 }
  0x20   : > { %v757_v53 = vld [vmem:[%s1175_s5 + $0x3] ss:$8 sm:$0x3]  ;;  %vm406_vm4 = vcmp.lt.s32.totalorder %v1064_v19, 1  ;;  %vm370_vm5 = vcmp.lt.s32.totalorder %v1064_v19, 16  ;;  %vm388_vm6 = vcmp.lt.s32.totalorder %v1064_v19, 15 }
  0x21   : > { %v412_v60 = vperm.slane %v757_v53, 0  ;;  %v413_v61 = vperm.slane %v757_v53, 1  ;;  %vm353_vm7 = vcmp.lt.s32.totalorder %v1064_v19, 17 }
  0x22   : > { %340 = vperm.xlu0 %826, %v337_v2  }
  0x8c   : > { %v333_v3 = vpop.permute.xlu0 %332 }
  0x8d   : > { %v335_v5 = vmul.f32 %v333_v3, %v327_v4  ;;  %v336_v10 = vmul.f32 %v333_v3, %v328_v8  ;;  %v756_v3 = vld [vmem:[%s1175_s5 + $0x2] ss:$8 sm:$0x3]  ;;  %v755_v4 = vld [vmem:[%s1175_s5 + $0x1] ss:$8 sm:$0x3] }
  0x8e   : > { %v395_v8 = vperm.slane %v756_v3, 1 }
  0x94   : > { %v341_v6 = vpop.permute.xlu0 %340 }
  0x95   : > { %v343_v7 = vadd.f32 %v341_v6, %v335_v5  ;;  %v344_v11 = vadd.f32 %v341_v6, %v336_v10  ;;  %v376_v10 = vperm.slane %v755_v4, 0 }
  0x97   : > { %v1041_v9 = vmax.f32 %v343_v7, 0.0  ;;  %v1046_v12 = vmax.f32 %v344_v11, 0.0  ;;  %v394_v7 = vperm.slane %v756_v3, 0  ;;  %v377_v11 = vperm.slane %v755_v4, 1 }
  0x99   : > { %449 = vrot.lane.b32.xlu0 %v1041_v9, %s924_s26  ;;  %467 = vrot.lane.b32.xlu2 %v1041_v9, %s925_s10  ;;  %v428_v58 = vmul.f32 %v424_v45, %v1046_v12  ;;  %v427_v59 = vmul.f32 %v423_v52, %v1041_v9 }
  0x9a   : > { %485 = vrot.lane.b32.xlu1 %v1041_v9, %s926_s12 }
  0xa1   : > { %433 = vrot.lane.b32.xlu0 %v1046_v12, %s927_s13  ;;  %469 = vrot.lane.b32.xlu2 %v1046_v12, %s925_s10  ;;  %s767_s10 = sshll.u32 %s998_s9, 3 }
  0xa2   : > { %487 = vrot.lane.b32.xlu1 %v1046_v12, %s926_s12  ;;  %s609_s22 = scalar_lea.hbm %s1177_s7, %s767_s10 }
  0xa9   : > { %384 = vrot.lane.b32.xlu0 %v1041_v9, %s928_s17  ;;  %431 = vrot.lane.b32.xlu2 %v1041_v9, %s927_s13 }
  0xaa   : > { %451 = vrot.lane.b32.xlu1 %v1046_v12, %s924_s26  ;;  %s1112_s26 = sand.u32 1, %s913_s28  }
  0xab   : > { %s749_s21 = sshll.u32 %s1112_s26, 3  ;;  %s591_s9 = scalar_lea.sflag [#allocation4], %s1112_s26 }
  0xac   : > { %s309_s20 = scalar_lea.vmem [#allocation3], %s749_s21 }
  0xad   : > { %s611_s23 = sshll.u32 %s309_s20, 4  ;;  %s612_s23 = int_to_ptr.vmem [resolvable:$true] %s611_s23 }
  0xb1   : > { %368 = vrot.lane.b32.xlu0 %v1046_v12, %s929_s18  ;;  %404 = vrot.lane.b32.xlu2 %v1046_v12, %s930_s19 }
  0xb2   : > { %402 = vrot.lane.b32.xlu1 %v1041_v9, %s930_s19  ;;  %s623_s19 = scalar_lea.hbm %s1178_s8, %s767_s10 }
  0xb3   : > { %s627_s1 = sshll.u32 %s623_s19, 4  ;;  %s1125_s1 = int_to_ptr.hbm [resolvable:$true] %s627_s1 }
  0xb9   : > { %525 = vperm.xlu0 %826, %v522_v13   ;;  %366 = vrot.lane.b32.xlu2 %v1041_v9, %s929_s18 }
  0xba   : > { %386 = vrot.lane.b32.xlu1 %v1046_v12, %s928_s17 }
  0xc1   : > { %349 = vrot.lane.b32.xlu2 %v1046_v12, %s931_s24 }
  0xc2   : > { %347 = vrot.lane.b32.xlu1 %v1041_v9, %s931_s24  ;;  %s613_s24 = sshll.u32 %s609_s22, 4  ;;  %s847_s22 = scalar_lea.hbm %s1177_s7, 16  ;;  %s614_s24 = int_to_ptr.hbm [resolvable:$true] %s613_s24 }
  0xc3   : > { %s841_s10 = sshra.s32 %s614_s24, 4  ;;  %s842_s10 = int_to_ptr.hbm [resolvable:$true] %s841_s10 }
  0xc4   : > { %s843_s12 = scalar_lea.hbm %s842_s10, 8  ;;  %p848_p0 = scmp.lt.s32.totalorder %s842_s10, %s1177_s7 }
  0xc5   : > { %p844_p11 = scmp.ne.s32.totalorder %s842_s10, %s843_s12  ;;  %p849_p1 = scmp.lt.s32.totalorder %s847_s22, %s843_s12 }
  0xc7   : > { %p845_p12 = pnand %p844_p11, %p1015_p5  ;;  %p850_p2 = por %p849_p1, %p848_p0 }
  0xc9   : > { %p846_p13 = pneg %p845_p12 }
  0xcb   : > { %p851_p3 = pnand %p850_p2, %p846_p13 }
  0xf3   : > { %v468_v14 = vpop.permute.xlu2 %467 }
  0xfb   : > { %v470_v16 = vpop.permute.xlu2 %469 }
  0xfc   : > { %v472_v27 = vsel %vm471_vm0, %v468_v14, %v470_v16  ;;  %v473_v28 = vsel %vm471_vm0, %v470_v16, %v468_v14 }
  0xfd   : > { %v481_v36 = vmul.f32 %v477_v25, %v472_v27  ;;  %v482_v37 = vmul.f32 %v478_v26, %v473_v28 }
 0x103   : > { %v432_v31 = vpop.permute.xlu2 %431 }
 0x10b   : > { %v450_v17 = vpop.permute.xlu0 %449  ;;  %v405_v54 = vpop.permute.xlu2 %404 }
 0x10c   : > { %v486_v18 = vpop.permute.xlu1 %485 }
 0x113   : > { %v434_v32 = vpop.permute.xlu0 %433  ;;  %v367_v5 = vpop.permute.xlu2 %366 }
 0x114   : > { %v488_v24 = vpop.permute.xlu1 %487  ;;  %v436_v46 = vsel %vm435_vm2, %v432_v31, %v434_v32  ;;  %v437_v47 = vsel %vm435_vm2, %v434_v32, %v432_v31 }
 0x115   : > { %v490_v29 = vsel %vm489_vm1, %v486_v18, %v488_v24  ;;  %v491_v30 = vsel %vm489_vm1, %v488_v24, %v486_v18  ;;  %v445_v56 = vmul.f32 %v441_v43, %v436_v46  ;;  %v446_v57 = vmul.f32 %v442_v44, %v437_v47  ;;  %v356_v18 = vld [vmem:[%s1175_s5] ss:$8 sm:$0x3] }
 0x116   : > { %v499_v33 = vmul.f32 %v495_v22, %v490_v29  ;;  %v500_v34 = vmul.f32 %v496_v23, %v491_v30  ;;  %v358_v22 = vperm.slane %v356_v18, 0  ;;  %v359_v23 = vperm.slane %v356_v18, 1  ;;  %v503_v30 = vld [vmem:[%s1173_s3] sm:$0xff] }
 0x118   : > { %539 = vmatpush.msra.mxu0 %v499_v33  ;;  %559 = vmatpush.msra.mxu1 %v500_v34 }
 0x11a   : > { %540 = vmatpush.msra.mxu0 %v481_v36  ;;  %560 = vmatpush.msra.mxu1 %v482_v37 }
 0x11b   : > { %v385_v55 = vpop.permute.xlu0 %384  ;;  %v350_v24 = vpop.permute.xlu2 %349 }
 0x11c   : > { %v452_v42 = vpop.permute.xlu1 %451 }
 0x11d   : > { %v454_v48 = vsel %vm453_vm3, %v450_v17, %v452_v42  ;;  %v455_v49 = vsel %vm453_vm3, %v452_v42, %v450_v17 }
 0x11e   : > { %v463_v50 = vmul.f32 %v459_v40, %v454_v48  ;;  %v464_v51 = vmul.f32 %v460_v41, %v455_v49 }
 0x120   : > { %541 = vmatpush.msra.mxu0 %v463_v50  ;;  %561 = vmatpush.msra.mxu1 %v464_v51 }
 0x122   : > { %542 = vmatpush.msra.mxu0 %v445_v56  ;;  %562 = vmatpush.msra.mxu1 %v446_v57 }
 0x123   : > { %v369_v6 = vpop.permute.xlu0 %368 }
 0x124   : > { %563 = vmatpush.msra.mxu1 %v428_v58  ;;  %v403_v62 = vpop.permute.xlu1 %402  ;;  %543 = vmatpush.msra.mxu0 %v427_v59  ;;  %v371_v12 = vsel %vm370_vm5, %v367_v5, %v369_v6  ;;  %v372_v13 = vsel %vm370_vm5, %v369_v6, %v367_v5 }
 0x125   : > { %v407_v63 = vsel %vm406_vm4, %v403_v62, %v405_v54  ;;  %v408_v0 = vsel %vm406_vm4, %v405_v54, %v403_v62  ;;  %v380_v20 = vmul.f32 %v376_v10, %v372_v13  ;;  %v381_v21 = vmul.f32 %v377_v11, %v371_v12 }
 0x126   : > { %v416_v1 = vmul.f32 %v412_v60, %v408_v0  ;;  %v417_v2 = vmul.f32 %v413_v61, %v407_v63 }
 0x128   : > { %544 = vmatpush.msra.mxu0 %v416_v1  ;;  %564 = vmatpush.msra.mxu1 %v417_v2 }
 0x12b   : > { %v526_v19 = vpop.permute.xlu0 %525 }
 0x12c   : > { %v387_v9 = vpop.permute.xlu1 %386 }
 0x12d   : > { %v389_v14 = vsel %vm388_vm6, %v385_v55, %v387_v9  ;;  %v390_v15 = vsel %vm388_vm6, %v387_v9, %v385_v55 }
 0x12e   : > { %v398_v16 = vmul.f32 %v394_v7, %v390_v15  ;;  %v399_v17 = vmul.f32 %v395_v8, %v389_v14 }
 0x130   : > { %545 = vmatpush.msra.mxu0 %v398_v16  ;;  %565 = vmatpush.msra.mxu1 %v399_v17 }
 0x132   : > { %546 = vmatpush.msra.mxu0 %v380_v20  ;;  %566 = vmatpush.msra.mxu1 %v381_v21 }
 0x134   : > { %v348_v25 = vpop.permute.xlu1 %347 }
 0x135   : > { %v354_v26 = vsel %vm353_vm7, %v348_v25, %v350_v24  ;;  %v355_v27 = vsel %vm353_vm7, %v350_v24, %v348_v25 }
 0x136   : > { %v362_v28 = vmul.f32 %v358_v22, %v355_v27  ;;  %v363_v29 = vmul.f32 %v359_v23, %v354_v26 }
 0x138   : > { %547 = vmatpush.msra.mxu0 %v362_v28  ;;  %567 = vmatpush.msra.mxu1 %v363_v29 }
 0x139   : > { %763 = vmatmul.msk.f32.vlgmr.msra.gmra.mxu0 %vm528_vm8, %v503_v30  ;;  %764 = vmatmul.msk.f32.vlgmr.msra.gmra.mxu1 %vm528_vm8, %v503_v30 }
 0x1b6   : > { %v549_v31 = vpop.f32.mrf.mxu0  ;;  %v569_v32 = vpop.f32.mrf.mxu1 }
 0x1b7   : > { %v550_v33 = vadd.f32 %v549_v31, %v526_v19  ;;  %v570_v34 = vadd.f32 %v569_v32, %v526_v19 }
 0x1b9   : > { %572 = vst [vmem:[%s326_s25] sm:$0xff] %v550_v33  ;;  %v574_v35 = vadd.f32 %v570_v34, %v550_v33  ;;  %v579_v36 = vmul.f32 %v550_v33, %v550_v33  ;;  %v580_v37 = vmul.f32 %v570_v34, %v570_v34 }
 0x1ba   : > { %573 = vst [vmem:[%s326_s25 + $0x8] sm:$0xff] %v570_v34  ;;  %s316_s25 = scalar_lea.vmem [#allocation5], %s749_s21 }
 0x1bb   : > { %575 = vadd.xlane.f32.xlu1 %v574_v35  ;;  %v581_v38 = vadd.f32 %v580_v37, %v579_v36  ;;  %s625_s0 = sshll.u32 %s316_s25, 4  ;;  %s1123_s0 = int_to_ptr.vmem [resolvable:$true] %s625_s0 }
 0x1bd   : > { %582 = vadd.xlane.f32.xlu2 %v581_v38 }
 0x22e   : > { %v576_v39 = vpop.xlane.xlu1 %575 }
 0x22f   : > { %578 = vst.msk [vmem:[%s309_s20] sm:$0xff] %vm577_vm9, %v576_v39 }
 0x230   : > { %v583_v40 = vpop.xlane.xlu2 %582 }
 0x231   : > { %854 = shalt.err (!%p851_p3)
}
 0x232   : > { %773 = dma.vmem_to_hbm [thread:$0]  (%p1015_p5), %s612_s23, 128, %s614_s24, %s591_s9   ;;  %584 = vst.msk [vmem:[%s316_s25] sm:$0xff] %vm577_vm9, %v583_v40 }
 0x233   : > { %s596_s19 = scalar_lea.sflag [#allocation6], %s1112_s26  ;;  %s869_s20 = sshra.s32 %s1125_s1, 4  ;;  %s870_s20 = int_to_ptr.hbm [resolvable:$true] %s869_s20 }
 0x234   : > { %s871_s21 = scalar_lea.hbm %s870_s20, 8  ;;  %s875_s13 = scalar_lea.hbm %s1178_s8, 16 }
 0x235   : > { %p872_p4 = scmp.ne.s32.totalorder %s870_s20, %s871_s21  ;;  %p876_p9 = scmp.lt.s32.totalorder %s870_s20, %s1178_s8 }
 0x236   : > { %p877_p10 = scmp.lt.s32.totalorder %s875_s13, %s871_s21 }
 0x237   : > { %p873_p7 = pnand %p872_p4, %p1015_p5 }
 0x238   : > { %p878_p11 = por %p877_p10, %p876_p9 }
 0x239   : > { %p874_p8 = pneg %p873_p7 }
 0x23b   : > { %p879_p12 = pnand %p878_p11, %p874_p8 }
 0x23d   : > { %882 = shalt.err (!%p879_p12)
}
 0x23e   : > { %774 = dma.vmem_to_hbm [thread:$0]  (%p1015_p5), %s1123_s0, 128, %s1125_s1, %s596_s19  }
 0x23f PF: > { %p784_p13 = scmp.ge.s32.totalorder %s921_s30, 2  ;;  %s647_s26 = sand.u32 1, %s909_s27  }
 0x240   : > { %s648_s23 = scalar_lea.sflag [#allocation4], %s647_s26 }
 0x241   : > { %p778_p0 = pnand %p784_p13, %p1019_p6 }
 0x243   : > { %p779_p1 = pneg %p778_p0 }
 0x245   : > { %900 = dma.done.wait (%p779_p1), %s648_s23, 128  }
 0x246   : > { %902 = vsyncadd (%p779_p1), %s648_s23, 4294967168  ;;  %s658_s24 = scalar_lea.sflag [#allocation6], %s647_s26 }
 0x247   : > { %904 = dma.done.wait (%p779_p1), %s658_s24, 128  }
 0x248   : > { %906 = vsyncadd (%p779_p1), %s658_s24, 4294967168  ;;  %p22_p5 = scmp.ge.s32.totalorder %s1002_s11, 4   ;;  %s1185_s27 = smov %s913_s28 }
 0x249   : > { %s1186_s28 = smov %s917_s29  ;;  %s1187_s29 = smov %s1013_s14 }
 0x24a   : > { %s1188_s30 = smov %s1002_s11  ;;  %24 = sbr.rel (!%p22_p5) target bundleno = 8 (0x8), region = 116 }
 0x24f   :  { %664 = vsyncpa [#allocation4], 1 }
 0x250   :  { %666 = vsyncpa [#allocation4 + $0x1], 1 }
 0x251   :  { %667 = vsyncpa [#allocation6], 1 }
 0x252   :  { %669 = vsyncpa [#allocation6 + $0x1], 1 }

</bundles_post_ra>
